<compile_context>
chip_gen: v7x
topology: tpu7x:2x2x1
jax: 0.10.0
libtpu: 0.0.40
codegen_flags: <defaults>
</compile_context>

<pallas_src>
import functools

import jax
import jax.numpy as jnp
import numpy as np
from jax.experimental import pallas as pl
from jax.experimental.pallas import tpu as pltpu


# ------------------------------ Pallas kernels ------------------------------
def _pooling_kernel(xT_ref, apT_ref, pooled_ref, acc_ref, *, x_resident):
    """Stage 1.  Grid = (Nc tiles [parallel], Nf tiles [arbitrary, last]).

    acc[Cin_p, tn] += x_T[:, k-tile] @ A_pool_T[k-tile, i-tile]
    finalize: pooled_T[i-tile] = acc (bf16)
    """
    k = pl.program_id(1)

    @pl.when(k == 0)
    def _init():
        acc_ref[...] = jnp.zeros_like(acc_ref)

    xk = xT_ref[k] if x_resident else xT_ref[0]          # [Cin_p, tk] bf16
    acc_ref[...] += jnp.dot(xk, apT_ref[...],
                            preferred_element_type=jnp.float32)

    @pl.when(k == pl.num_programs(1) - 1)
    def _fin():
        pooled_ref[0] = acc_ref[...].astype(pooled_ref.dtype)


def _graphconv_kernel(pooled_ref, agT_ref, wrT_ref, wnT_ref, b_ref,
                      out_ref, acc_ref):
    """Stage 2.  Grid = (Nc out-tiles [parallel], Nc red-tiles [arbitrary]).

    acc[Cin_p, tn] += pooled_T[:, k-tile] @ A_graph_T[k-tile, i-tile]
    finalize: out_T[i-tile] = W_root_T @ pooled_T[:, i-tile]
                            + W_nbr_T  @ acc + bias
    """
    i = pl.program_id(0)
    k = pl.program_id(1)

    @pl.when(k == 0)
    def _init():
        acc_ref[...] = jnp.zeros_like(acc_ref)

    acc_ref[...] += jnp.dot(pooled_ref[k], agT_ref[...],
                            preferred_element_type=jnp.float32)

    @pl.when(k == pl.num_programs(1) - 1)
    def _fin():
        out = (jnp.dot(wrT_ref[...], pooled_ref[i],
                       preferred_element_type=jnp.float32)
               + jnp.dot(wnT_ref[...], acc_ref[...].astype(jnp.bfloat16),
                         preferred_element_type=jnp.float32)
               + b_ref[...])
        out_ref[...] = out.astype(out_ref.dtype)


# --------------------------------- wrapper -----------------------------------
def _round_up(a, m):
    return (a + m - 1) // m * m


def _pad2(a, rows, cols):
    return jnp.pad(a, ((0, rows - a.shape[0]), (0, cols - a.shape[1])))


def conv_block3_pallas(x, a_pool, a_graph, w_root, w_nbr, bias, *,
                       tn_target=512, tk_target=1024,
                       vmem_limit_bytes=48 * 1024 * 1024,
                       x_resident_budget=24 * 1024 * 1024):
    """x: [Nf, Cin] f32, a_pool: [Nc, Nf] f32, a_graph: [Nc, Nc] f32.
    Returns out: [Nc, Cout] f32."""
    n_coarse, n_fine = a_pool.shape
    c_in = x.shape[1]
    c_out = w_root.shape[1]

    # Node-dim tiles (lane axis); pad node counts up to tile multiples.
    tn = min(tn_target, _round_up(n_coarse, 128))
    tk = min(tk_target, _round_up(n_fine, 128))
    nc_p = _round_up(n_coarse, tn)
    nf_p = _round_up(n_fine, tk)
    n_i = nc_p // tn
    n_k = nf_p // tk

    # Channel dims: Cin -> multiple of 16 (bf16 packing), Cout -> multiple of 8.
    c_in_p = _round_up(c_in, 16)
    c_out_p = _round_up(c_out, 8)

    # --- channel-major bf16 operands (node dims on lanes) ---
    xT = _pad2(x.T.astype(jnp.bfloat16), c_in_p, nf_p)            # [Cin_p, Nf_p]
    xT3 = xT.reshape(c_in_p, n_k, tk).transpose(1, 0, 2)          # [n_k, Cin_p, tk]
    apT = _pad2(a_pool.T.astype(jnp.bfloat16), nf_p, nc_p)        # [Nf_p, Nc_p]
    agT = _pad2(a_graph.T.astype(jnp.bfloat16), nc_p, nc_p)       # [Nc_p, Nc_p]
    wrT = _pad2(w_root.T.astype(jnp.bfloat16), c_out_p, c_in_p)   # [Cout_p, Cin_p]
    wnT = _pad2(w_nbr.T.astype(jnp.bfloat16), c_out_p, c_in_p)    # [Cout_p, Cin_p]
    b2 = jnp.pad(bias.astype(jnp.float32),
                 (0, c_out_p - c_out)).reshape(c_out_p, 1)        # [Cout_p, 1]

    # Keep x_T fully VMEM-resident (one DMA total) unless it blows the budget.
    x_resident = (xT3.size * 2) <= x_resident_budget
    if x_resident:
        x_spec = pl.BlockSpec((n_k, c_in_p, tk), lambda i, k: (0, 0, 0))
    else:
        x_spec = pl.BlockSpec((1, c_in_p, tk), lambda i, k: (k, 0, 0))

    # ---------------- Stage 1: pooling (dominant HBM stream = A_pool_T) -----
    flops1 = int(2 * c_in_p * nf_p * nc_p)
    bytes1 = int((xT3.size + apT.size + n_i * c_in_p * tn) * 2)
    pooled3 = pl.pallas_call(
        functools.partial(_pooling_kernel, x_resident=x_resident),
        out_shape=jax.ShapeDtypeStruct((n_i, c_in_p, tn), jnp.bfloat16),
        grid_spec=pltpu.PrefetchScalarGridSpec(
            num_scalar_prefetch=0,
            grid=(n_i, n_k),
            in_specs=[
                x_spec,                                             # x_T
                pl.BlockSpec((tk, tn), lambda i, k: (k, i)),        # A_pool_T
            ],
            out_specs=pl.BlockSpec((1, c_in_p, tn), lambda i, k: (i, 0, 0)),
            scratch_shapes=[pltpu.VMEM((c_in_p, tn), jnp.float32)],
        ),
        compiler_params=pltpu.CompilerParams(
            dimension_semantics=("parallel", "arbitrary"),
            vmem_limit_bytes=vmem_limit_bytes,
        ),
        cost_estimate=pl.CostEstimate(flops=flops1, transcendentals=0,
                                      bytes_accessed=bytes1),
    )(xT3, apT)

    # ---------------- Stage 2: coarse GraphConv on the tiny pooled tensor ---
    flops2 = int(2 * c_in_p * nc_p * nc_p + 2 * 2 * c_in_p * c_out_p * nc_p)
    bytes2 = int((pooled3.size + agT.size + wrT.size + wnT.size) * 2
                 + (b2.size + c_out_p * nc_p) * 4)
    outT = pl.pallas_call(
        _graphconv_kernel,
        out_shape=jax.ShapeDtypeStruct((c_out_p, nc_p), jnp.float32),
        grid_spec=pltpu.PrefetchScalarGridSpec(
            num_scalar_prefetch=0,
            grid=(n_i, n_i),
            in_specs=[
                pl.BlockSpec((n_i, c_in_p, tn), lambda i, k: (0, 0, 0)),  # pooled_T (resident)
                pl.BlockSpec((tn, tn), lambda i, k: (k, i)),              # A_graph_T
                pl.BlockSpec((c_out_p, c_in_p), lambda i, k: (0, 0)),     # W_root_T
                pl.BlockSpec((c_out_p, c_in_p), lambda i, k: (0, 0)),     # W_nbr_T
                pl.BlockSpec((c_out_p, 1), lambda i, k: (0, 0)),          # bias
            ],
            out_specs=pl.BlockSpec((c_out_p, tn), lambda i, k: (0, i)),
            scratch_shapes=[pltpu.VMEM((c_in_p, tn), jnp.float32)],
        ),
        compiler_params=pltpu.CompilerParams(
            dimension_semantics=("parallel", "arbitrary"),
            vmem_limit_bytes=vmem_limit_bytes,
        ),
        cost_estimate=pl.CostEstimate(flops=flops2, transcendentals=0,
                                      bytes_accessed=bytes2),
    )(pooled3, agT, wrT, wnT, b2)

    return outT[:c_out, :n_coarse].T                               # [Nc, Cout]


# -------------------------------- glue (JAX) ---------------------------------
def build_dense_adj(edge_index, edge_attr, n_dst, n_src):
    """Turn (edge_index, edge_attr) scatter-add into a dense [n_dst, n_src]
    adjacency so aggregation becomes an MXU matmul inside the kernels."""
    src = edge_index[0]
    dst = edge_index[1]
    adj = jnp.zeros((n_dst, n_src), jnp.float32)
    adj = adj.at[dst, src].add(edge_attr.astype(jnp.float32))
    return adj


def reference_forward(x, pool_ei, pool_ea, graph_ei, graph_ea,
                      n_coarse, w_root, w_nbr, bias):
    """Pure-JAX f32 edge-list reference of the assumed _ConvBlock3 semantics."""
    pooled = jnp.zeros((n_coarse, x.shape[1]), jnp.float32)
    pooled = pooled.at[pool_ei[1]].add(pool_ea[:, None] * x[pool_ei[0]])
    agg = jnp.zeros_like(pooled)
    agg = agg.at[graph_ei[1]].add(graph_ea[:, None] * pooled[graph_ei[0]])
    return pooled @ w_root + agg @ w_nbr + bias[None, :]


def matched_precision_reference(x, a_pool, a_graph, w_root, w_nbr, bias):
    """Same bf16 operands / f32 accumulation / bf16 intermediates as kernels."""
    xT = x.T.astype(jnp.bfloat16)
    apT = a_pool.T.astype(jnp.bfloat16)
    pooled_T = jnp.dot(xT, apT,
                       preferred_element_type=jnp.float32).astype(jnp.bfloat16)
    agT = a_graph.T.astype(jnp.bfloat16)
    agg_T = jnp.dot(pooled_T, agT,
                    preferred_element_type=jnp.float32).astype(jnp.bfloat16)
    wrT = w_root.T.astype(jnp.bfloat16)
    wnT = w_nbr.T.astype(jnp.bfloat16)
    outT = (jnp.dot(wrT, pooled_T, preferred_element_type=jnp.float32)
            + jnp.dot(wnT, agg_T, preferred_element_type=jnp.float32)
            + bias.astype(jnp.float32).reshape(-1, 1))
    return outT.T


# ----------------------------------- main ------------------------------------
if __name__ == "__main__":
    key = jax.random.PRNGKey(0)
    k_x, k_pe, k_pa, k_ge, k_ga, k_wr, k_wn, k_b = jax.random.split(key, 8)

    # Shapes consistent with a coarse graph block; big enough that both grids
    # have >= 2 tiles on every axis (exercises init/accumulate/finalize).
    n_fine, n_coarse = 2048, 1024        # poolDataForward -> n_coarse
    c_in, c_out = 8, 16
    e_pool, e_graph = 4096, 2048

    # fine-node features
    x = jax.random.normal(k_x, (n_fine, c_in), jnp.float32)

    # pooling graph (fine -> coarse) edges + scalar edge weights
    pool_src = jax.random.randint(k_pe, (e_pool,), 0, n_fine)
    pool_dst = jax.random.randint(jax.random.fold_in(k_pe, 1), (e_pool,), 0, n_coarse)
    pool_ei = jnp.stack([pool_src, pool_dst])
    pool_ea = jax.random.uniform(k_pa, (e_pool,), jnp.float32)

    # coarse point-point graph edges + scalar edge weights
    g_src = jax.random.randint(k_ge, (e_graph,), 0, n_coarse)
    g_dst = jax.random.randint(jax.random.fold_in(k_ge, 1), (e_graph,), 0, n_coarse)
    graph_ei = jnp.stack([g_src, g_dst])
    graph_ea = jax.random.uniform(k_ga, (e_graph,), jnp.float32)

    # deterministic parameter init (GraphConv: W_root, W_nbr, bias)
    lim = 1.0 / np.sqrt(c_in)
    w_root = jax.random.uniform(k_wr, (c_in, c_out), jnp.float32, -lim, lim)
    w_nbr = jax.random.uniform(k_wn, (c_in, c_out), jnp.float32, -lim, lim)
    bias = jax.random.uniform(k_b, (c_out,), jnp.float32, -lim, lim)

    # glue: dense adjacency matrices for the scatter-adds
    a_pool = build_dense_adj(pool_ei, pool_ea, n_coarse, n_fine)
    a_graph = build_dense_adj(graph_ei, graph_ea, n_coarse, n_coarse)

    out = conv_block3_pallas(x, a_pool, a_graph, w_root, w_nbr, bias)
    out = jax.block_until_ready(out)

    # 1) tight check vs matched-precision (bf16 operands / f32 acc) reference
    ref_bf16 = jax.block_until_ready(
        matched_precision_reference(x, a_pool, a_graph, w_root, w_nbr, bias))
    np.testing.assert_allclose(np.asarray(out), np.asarray(ref_bf16),
                               rtol=2e-2, atol=2e-2)

    # 2) loose check vs full-f32 edge-list reference (bf16 rounding allowed)
    ref_f32 = jax.block_until_ready(
        reference_forward(x, pool_ei, pool_ea, graph_ei, graph_ea,
                          n_coarse, w_root, w_nbr, bias))
    rel_err = (np.max(np.abs(np.asarray(out) - np.asarray(ref_f32)))
               / (np.max(np.abs(np.asarray(ref_f32))) + 1e-6))
    assert rel_err < 5e-2, f"bf16 path rel_err too large: {rel_err}"

    print("KERNEL_OK")
</pallas_src>

<mosaic_0001>
module attributes {stable_mosaic.version = 11 : i64} {
  func.func @_pooling_kernel(%arg0: i32, %arg1: i32, %arg2: memref<2x16x1024xbf16, #tpu.memory_space<vmem>>, %arg3: memref<1024x512xbf16, #tpu.memory_space<vmem>>, %arg4: memref<1x16x512xbf16, #tpu.memory_space<vmem>>, %arg5: memref<16x512xf32, #tpu.memory_space<vmem>>) attributes {dimension_semantics = [#tpu.dimension_semantics<parallel>, #tpu.dimension_semantics<arbitrary>], iteration_bounds = array<i64: 2, 2>, scalar_prefetch = 0 : i64, scratch_operands = 1 : i64, tpu.core_type = #tpu.core_type<tc>, window_params = [{pipeline_mode = #tpu.pipeline_mode<synchronous>, transform_indices = @transform_0, window_bounds = array<i64: 2, 16, 1024>}, {transform_indices = @transform_1, window_bounds = array<i64: 1024, 512>}, {transform_indices = @transform_2, window_bounds = array<i64: 1, 16, 512>}]} {
    %c0_i32 = arith.constant 0 : i32
    %0 = arith.cmpi eq, %arg1, %c0_i32 : i32
    %1 = arith.extui %0 : i1 to i32
    %c0_i32_0 = arith.constant 0 : i32
    %2 = arith.cmpi ne, %1, %c0_i32_0 : i32
    scf.if %2 {
      %cst_9 = arith.constant 0.000000e+00 : f32
      %14 = vector.broadcast %cst_9 : f32 to vector<16x512xf32>
      %c0_10 = arith.constant 0 : index
      %c0_11 = arith.constant 0 : index
      %15 = vector.load %arg5[%c0_10, %c0_11] : memref<16x512xf32, #tpu.memory_space<vmem>>, vector<16x512xf32>
      tpu.vector_store %arg5[%c0_10, %c0_11], %14 {strides = array<i32>} : memref<16x512xf32, #tpu.memory_space<vmem>>, vector<16x512xf32>,
    } else {
    }
    %3 = arith.index_cast %arg1 : i32 to index
    %c0 = arith.constant 0 : index
    %c0_1 = arith.constant 0 : index
    %4 = vector.load %arg2[%3, %c0, %c0_1] : memref<2x16x1024xbf16, #tpu.memory_space<vmem>>, vector<1x16x1024xbf16>
    %5 = vector.shape_cast %4 : vector<1x16x1024xbf16> to vector<16x1024xbf16>
    %c0_2 = arith.constant 0 : index
    %c0_3 = arith.constant 0 : index
    %6 = vector.load %arg5[%c0_2, %c0_3] : memref<16x512xf32, #tpu.memory_space<vmem>>, vector<16x512xf32>
    %c0_4 = arith.constant 0 : index
    %c0_5 = arith.constant 0 : index
    %7 = vector.load %arg3[%c0_4, %c0_5] : memref<1024x512xbf16, #tpu.memory_space<vmem>>, vector<1024x512xbf16>
    %cst = arith.constant dense<0.000000e+00> : vector<16x512xf32>
    %8 = tpu.matmul %5, %7, %cst {dimension_numbers = #tpu.dot_dimension_numbers<[1], [0], [0], [1], [0, 0, 1, 1], [], []>} : vector<16x1024xbf16>, vector<1024x512xbf16>, vector<16x512xf32> -> vector<16x512xf32>
    %9 = arith.addf %6, %8 : vector<16x512xf32>
    %c0_6 = arith.constant 0 : index
    %c0_7 = arith.constant 0 : index
    %10 = vector.load %arg5[%c0_6, %c0_7] : memref<16x512xf32, #tpu.memory_space<vmem>>, vector<16x512xf32>
    tpu.vector_store %arg5[%c0_6, %c0_7], %9 {strides = array<i32>} : memref<16x512xf32, #tpu.memory_space<vmem>>, vector<16x512xf32>,
    %c1_i32 = arith.constant 1 : i32
    %11 = arith.cmpi eq, %arg1, %c1_i32 : i32
    %12 = arith.extui %11 : i1 to i32
    %c0_i32_8 = arith.constant 0 : i32
    %13 = arith.cmpi ne, %12, %c0_i32_8 : i32
    scf.if %13 {
      %c0_9 = arith.constant 0 : index
      %c0_10 = arith.constant 0 : index
      %14 = vector.load %arg5[%c0_9, %c0_10] : memref<16x512xf32, #tpu.memory_space<vmem>>, vector<16x512xf32>
      %15 = arith.truncf %14 : vector<16x512xf32> to vector<16x512xbf16>
      %c0_11 = arith.constant 0 : index
      %c0_12 = arith.constant 0 : index
      %c0_13 = arith.constant 0 : index
      %16 = vector.load %arg4[%c0_11, %c0_12, %c0_13] : memref<1x16x512xbf16, #tpu.memory_space<vmem>>, vector<1x16x512xbf16>
      %17 = vector.shape_cast %16 : vector<1x16x512xbf16> to vector<16x512xbf16>
      %18 = vector.shape_cast %15 : vector<16x512xbf16> to vector<1x16x512xbf16>
      tpu.vector_store %arg4[%c0_11, %c0_12, %c0_13], %18 {strides = array<i32>} : memref<1x16x512xbf16, #tpu.memory_space<vmem>>, vector<1x16x512xbf16>,
    } else {
    }
    return
  }
  func.func @transform_0(%arg0: i32, %arg1: i32) -> (i32, i32, i32) {
    %c0_i32 = arith.constant 0 : i32
    %c0_i32_0 = arith.constant 0 : i32
    %c0_i32_1 = arith.constant 0 : i32
    %c0_i32_2 = arith.constant 0 : i32
    return %c0_i32, %c0_i32_0, %c0_i32_1 : i32, i32, i32
  }
  func.func @transform_1(%arg0: i32, %arg1: i32) -> (i32, i32) {
    %c0_i32 = arith.constant 0 : i32
    return %arg1, %arg0 : i32, i32
  }
  func.func @transform_2(%arg0: i32, %arg1: i32) -> (i32, i32, i32) {
    %c0_i32 = arith.constant 0 : i32
    %c0_i32_0 = arith.constant 0 : i32
    %c0_i32_1 = arith.constant 0 : i32
    return %arg0, %c0_i32, %c0_i32_0 : i32, i32, i32
  }
}

</mosaic_0001>

<bundles_post_ra>
// kernel: tpu_custom_call.1
= control target key start
LH: loop header
LB: loop body
LE: loop exit
PB: predicated region body
PF: predicated region fallthrough
CT: control target
= control target key end

     0   :  { %s3928_s0 = inlined_call_operand.hbm [shape: bf16[2,16,1024], index: 0, kind: input, shape index: {}]   ;;  %s3929_s1 = inlined_call_operand.hbm [shape: bf16[2048,1024], index: 1, kind: input, shape index: {}]   ;;  %s3930_s2 = inlined_call_operand.hbm [shape: bf16[2,16,512], index: 2, kind: output, shape index: {}]  }
   0x1   :  { %3942 = sst [smem:[#allocation16_spill]] %s3928_s0 }
   0x2   :  { %7 = vsyncpa [#allocation4], 0 }
   0x3   :  { %8 = vsyncpa [#allocation7], 0 }
   0x4   :  { %10 = vsyncpa [#allocation7 + $0x1], 0 }
   0x5   :  { %11 = vsyncpa [#allocation5], 0 }
   0x6   :  { %13 = vsyncpa [#allocation5 + $0x1], 0  ;;  %s3355_s9 = smov 0   ;;  %s3357_s10 = smov 0  }
   0x7   :  { %s3359_s11 = smov 0   ;;  %s3361_s12 = smov 0  }
   0x8   :  { %s3363_s13 = smov 0   ;;  %s3365_s14 = smov 0  }
   0x9   :  { %s3367_s15 = smov 0   ;;  %s3369_s16 = smov 0  }
   0xa   :  { %s3371_s17 = smov 0   ;;  %s3373_s18 = smov 0  }
   0xb   :  { %s3375_s19 = smov 0  }
   0xc LB: > { %3943 = sst [smem:[#allocation12_spill]] %s3288_s9  ;;  %s2318_s20 = sadd.s32 4294967295, %s3328_s19   ;;  %s3328_s19 = sphi %s3375_s19, %s19_s19   ;;  %s3324_s18 = sphi %s3373_s18, %s3978_s18   ;;  %s3320_s17 = sphi %s3371_s17, %s3977_s17   ;;  %s3316_s16 = sphi %s3369_s16, %s3976_s16   ;;  %s3312_s15 = sphi %s3367_s15, %s3975_s15   ;;  %s3308_s14 = sphi %s3365_s14, %s3974_s14   ;;  %s3304_s13 = sphi %s3363_s13, %s3973_s13   ;;  %s3300_s12 = sphi %s3361_s12, %s3972_s12   ;;  %s3296_s11 = sphi %s3359_s11, %s3971_s11   ;;  %s3292_s10 = sphi %s3357_s10, %s3970_s10   ;;  %s3288_s9 = sphi %s3355_s9, %s3969_s9  }
   0xd   : > { %s2319_s21 = sadd.s32 4294967294, %s3328_s19   ;;  %p68_p0 = scmp.ne.s32.totalorder %s3308_s14, %s3304_s13 }
   0xe   : > { %p69_p1 = scmp.eq.s32.totalorder %s3328_s19, 0  ;;  %p74_p2 = scmp.ne.s32.totalorder %s3304_s13, %s3300_s12 }
   0xf   : > { %p3415_p3 = scmp.eq.s32.totalorder %s2318_s20, 0  ;;  %p97_p5 = scmp.ne.s32.totalorder %s3296_s11, %s3292_s10 }
  0x10   : > { %p3420_p4 = por %p69_p1, %p68_p0  ;;  %p98_p7 = scmp.eq.s32.totalorder %s2318_s20, 3 }
  0x11   : > { %s3944_s23 = scalar_select %p3415_p3, 1, 0 }
  0x12   : > { %p3428_p6 = por %p3415_p3, %p74_p2  ;;  %p103_p8 = scmp.ne.s32.totalorder %s3292_s10, %s3288_s9 }
  0x13   : > { %p104_p9 = scmp.eq.s32.totalorder %s2319_s21, 3  ;;  %p3434_p10 = por %p98_p7, %p97_p5 }
  0x14   : > { %s3946_s26 = scalar_select %p3428_p6, 1, 0 }
  0x15   : > { %s3947_s27 = scalar_select %p3434_p10, 1, 0 }
  0x16   : > { %p2320_p11 = scmp.ge.s32.totalorder %s3328_s19, 1  ;;  %p3439_p12 = por %p104_p9, %p103_p8 }
  0x17   : > { %p111_p13 = scmp.lt.s32.totalorder %s3328_s19, 5  ;;  %s3330_s30 = smov [#allocation3]  }
  0x18   : > { %s3948_s28 = scalar_select %p3439_p12, 1, 0 }
  0x19   : > { %p3444_p0 = pnand %p2320_p11, %p111_p13  ;;  %s123_s3 = sshll.u32 %s3330_s30, 4  ;;  %s124_s3 = int_to_ptr.vmem [resolvable:$true] %s123_s3 }
  0x1a   : > { %3949 = sst [smem:[#allocation13_spill]] %s3948_s28  ;;  %p2661_p2 = scmp.lt.s32.totalorder %s3328_s19, 4 }
  0x1b   : > { %s3950_s29 = scalar_select %p3444_p0, 1, 0 }
  0x1c   : > { %p2648_p1 = pneg %p3444_p0  ;;  %p3459_p7 = pnand %p2661_p2, %p3420_p4 }
  0x1d   : > { %s3953_s0 = sld [smem:[#allocation16_spill]] }
  0x1e   : > { %p3453_p5 = pnand %p2648_p1, %p3415_p3 }
  0x1f   : > { %s3952_s5 = scalar_select %p3459_p7, 1, 0 }
  0x20   : > { %p3146_p9 = pneg %p3453_p5 }
  0x23   : > { %s3144_s8 = scalar_lea.hbm %s3953_s0, 2048 }
  0x24   : > { %p3145_p8 = scmp.ne.s32.totalorder %s3953_s0, %s3144_s8  ;;  %p3151_p1 = scmp.lt.u32.totalorder %s3144_s8, %s3953_s0 }
  0x26   : > { %p3147_p11 = pnand %p3146_p9, %p3145_p8 }
  0x28   : > { %p3148_p13 = pneg %p3147_p11 }
  0x2a   : > { %p3153_p4 = pnand %p3151_p1, %p3148_p13 }
  0x2c   : > { %3156 = shalt.err (!%p3153_p4)
}
  0x2d   : > { %s3157_s25 = scalar_lea.vmem %s124_s3, 2048  ;;  %p3165_p6 = scmp.lt.s32.totalorder %s124_s3, %s124_s3 }
  0x2e   : > { %p3158_p2 = scmp.ne.s32.totalorder %s124_s3, %s3157_s25  ;;  %p3166_p3 = scmp.lt.s32.totalorder %s3157_s25, %s3157_s25 }
  0x30   : > { %p3160_p12 = pnand %p3158_p2, %p3146_p9  ;;  %p3167_p0 = por %p3166_p3, %p3165_p6 }
  0x32   : > { %p3161_p10 = pneg %p3160_p12 }
  0x34   : > { %p3168_p7 = pnand %p3167_p0, %p3161_p10 }
  0x36   : > { %3171 = shalt.err (!%p3168_p7)
}
  0x37   : > { %s3937_s6 = smov 512   ;;  %s3332_s7 = smov 32  }
  0x38   : > { %2651 = dma.hbm_to_vmem [thread:$0]  (!%p3453_p5), %s3953_s0, 2048, %s124_s3, [#allocation4], %s3937_s6, %s3937_s6, %s3332_s7  }
  0x39   : > { %s28_s20 = sadd.s32 1, %s3320_s17  ;;  %s31_s21 = sadd.s32 1, %s3324_s18 }
  0x3a   : > { %p29_p3 = scmp.ge.s32.totalorder %s28_s20, 2  ;;  %s137_s30 = sand.u32 1, %s3308_s14  }
  0x3b   : > { %s2323_s25 = sshll.u32 %s137_s30, 11  ;;  %s2325_s4 = sshll.u32 %s3324_s18, 2 }
  0x3c   : > { %s3980_s20 = smov (%p29_p3, %s28_s20), 0  ;;  %s3982_s21 = smov (!%p29_p3, %s31_s21), %s3324_s18 }
  0x3d   : > { %3954 = sst [smem:[#allocation14_spill]] %s3980_s20  ;;  %s56_s22 = ssub.s32 %s3320_s17, %s3980_s20 }
  0x3e   : > { %p33_p6 = scmp.ge.s32.totalorder %s3982_s21, 2  ;;  %s2609_s24 = sshll.u32 %s3320_s17, 10 }
  0x3f   : > { %s141_s8 = scalar_lea.vmem [#allocation6], %s2323_s25  ;;  %s148_s7 = sadd.s32 %s2609_s24, %s2325_s4 }
  0x40   : > { %s151_s3 = sshll.u32 %s141_s8, 4  ;;  %s3984_s21 = smov (%p33_p6, %s3982_s21), 0  ;;  %s3493_s3 = int_to_ptr.vmem [resolvable:$true] %s151_s3 }
  0x41   : > { %3955 = sst [smem:[#allocation15_spill]] %s3984_s21  ;;  %s57_s12 = ssub.s32 %s3324_s18, %s3984_s21 }
  0x42   : > { %s2327_s6 = sshll.u32 %s148_s7, 6  ;;  %s58_s0 = sor.u32 %s57_s12, %s56_s22 }
  0x43   : > { %p85_p10 = scmp.eq.s32.totalorder %s57_s12, 0  ;;  %p59_p12 = scmp.eq.s32.totalorder %s58_s0, 0 }
  0x44   : > { %s3500_s9 = scalar_lea.hbm %s3929_s1, %s2327_s6  ;;  %s3956_s25 = sadd.s32 1, %s3296_s11 }
  0x45   : > { %s3505_s8 = scalar_select %p85_p10, %s3296_s11, %s3956_s25  }
  0x46   : > { %s3957_s24 = sadd.s32 1, %s3308_s14  ;;  %s3512_s21 = scalar_lea.sflag [#allocation7], %s137_s30 }
  0x47   : > { %s3510_s4 = scalar_select %p59_p12, %s3308_s14, %s3957_s24  }
  0x48   : > { %s3172_s22 = scalar_lea.hbm %s3500_s9, 32768  ;;  %p3958_p5 = scmp.ne.s32.totalorder %s3952_s5, 0 }
  0x49   : > { %p3173_p0 = scmp.ne.s32.totalorder %s3500_s9, %s3172_s22  ;;  %s3177_s6 = scalar_lea.hbm %s3929_s1, 131072 }
  0x4a   : > { %p3174_p7 = pneg %p3958_p5  ;;  %p3178_p11 = scmp.lt.u32.totalorder %s3500_s9, %s3929_s1 }
  0x4b   : > { %p3179_p13 = scmp.lt.u32.totalorder %s3177_s6, %s3172_s22  ;;  %p3181_p4 = scmp.lt.u32.totalorder %s3172_s22, %s3500_s9 }
  0x4c   : > { %p3175_p8 = pnand %p3174_p7, %p3173_p0 }
  0x4d   : > { %p3180_p1 = por %p3179_p13, %p3178_p11 }
  0x4e   : > { %p3176_p9 = pneg %p3175_p8 }
  0x4f   : > { %p3182_p2 = por %p3181_p4, %p3180_p1 }
  0x51   : > { %p3183_p3 = pnand %p3182_p2, %p3176_p9 }
  0x53   : > { %3186 = shalt.err (!%p3183_p3)
}
  0x54   : > { %s3187_s30 = scalar_lea.vmem %s3493_s3, 32768  ;;  %s3333_s12 = smov [#allocation6]  }
  0x55   : > { %p3188_p6 = scmp.ne.s32.totalorder %s3493_s3, %s3187_s30  ;;  %s3192_s25 = sshll.u32 %s3333_s12, 4  ;;  %s3193_s25 = int_to_ptr.vmem [resolvable:$false] %s3192_s25 }
  0x56   : > { %s3194_s24 = scalar_lea.vmem %s3193_s25, 65536  ;;  %p3195_p0 = scmp.lt.s32.totalorder %s3493_s3, %s3193_s25 }
  0x57   : > { %p3190_p10 = pnand %p3188_p6, %p3174_p7  ;;  %p3196_p8 = scmp.lt.s32.totalorder %s3194_s24, %s3187_s30 }
  0x59   : > { %p3191_p12 = pneg %p3190_p10  ;;  %p3197_p11 = por %p3196_p8, %p3195_p0 }
  0x5b   : > { %p3198_p13 = pnand %p3197_p11, %p3191_p12 }
  0x5d   : > { %3201 = shalt.err (!%p3198_p13)
}
  0x5e   : > { %s3334_s22 = smov 256   ;;  %s3335_s0 = smov 16  }
  0x5f   : > { %s3959_s28 = smov 512   ;;  %p3960_p7 = scmp.ne.s32.totalorder %s3950_s29, 0 }
  0x60   : > { %2655 = dma.hbm_to_vmem [thread:$0]  (!%p3958_p5), %s3500_s9, 32768, %s3493_s3, %s3512_s21, %s3959_s28, %s3334_s22, %s3335_s0  }
  0x61   : > { %163 = sbr.rel (%p3960_p7) target bundleno = 629 (0x275), region = 28  ;;  %p3961_p9 = scmp.ne.s32.totalorder (!%p3960_p7), %s3944_s23, 0 }
  0x68   : > { %3275 = dma.done.wait (%p3961_p9), [#allocation4], 2048  }
  0x69   : > { %3277 = vsyncadd (%p3961_p9), [#allocation4], 4294965248  ;;  %s169_s6 = sand.u32 1, %s3304_s13   ;;  %p3962_p1 = scmp.ne.s32.totalorder %s3946_s26, 0 }
  0x6a   : > { %s2330_s20 = sshll.u32 %s169_s6, 11  ;;  %s170_s7 = scalar_lea.sflag [#allocation7], %s169_s6 }
  0x6b   : > { %s3548_s30 = scalar_lea.vmem [#allocation6], %s2330_s20 }
  0x6c   : > { %3279 = dma.done.wait (%p3962_p1), %s170_s7, 32768  }
  0x6d   : > { %3281 = vsyncadd (%p3962_p1), %s170_s7, 4294934528  ;;  %s191_s9 = sand.u32 1, %s3292_s10   ;;  %p2332_p5 = scmp.ne.s32.totalorder %s3312_s15, 0 }
  0x6e   : > { %s2331_s29 = sshll.u32 %s191_s9, 5  ;;  %v3336_v0 = vmov (!%p2332_p5), 0.0  }
  0x6f   : > { %s3557_s5 = scalar_lea.vmem [#allocation8], %s2331_s29  ;;  %199 = sbr.rel (%p2332_p5) target bundleno = 118 (0x76), region = 40  ;;  %200 = vst [vmem:[#allocation2] sm:$0xff] (!%p2332_p5), %v3336_v0  ;;  %201 = vst [vmem:[#allocation2 + $0x8] sm:$0xff] (!%p2332_p5), %v3336_v0 }
  0x70   : > { %202 = vst [vmem:[#allocation2 + $0x10] sm:$0xff] (!%p2332_p5), %v3336_v0  ;;  %203 = vst [vmem:[#allocation2 + $0x18] sm:$0xff] (!%p2332_p5), %v3336_v0 }
  0x71   : > { %204 = vst [vmem:[#allocation2 + $0x20] sm:$0xff] (!%p2332_p5), %v3336_v0  ;;  %205 = vst [vmem:[#allocation2 + $0x28] sm:$0xff] (!%p2332_p5), %v3336_v0 }
  0x72   : > { %206 = vst [vmem:[#allocation2 + $0x30] sm:$0xff] (!%p2332_p5), %v3336_v0  ;;  %207 = vst [vmem:[#allocation2 + $0x38] sm:$0xff] (!%p2332_p5), %v3336_v0 }
  0x76 PF: > { %v2760_v1 = vld [vmem:[%s3548_s30 + $0x4] ss:$16 sps:$4 sm:$0xff]   ;;  %v2762_v2 = vld [vmem:[%s3548_s30 + $0xc] ss:$16 sps:$4 sm:$0xff]   ;;  %v2764_v3 = vld [vmem:[%s3548_s30] ss:$16 sps:$4 sm:$0xff]  }
  0x77   : > { %1803 = vmatprep.subr.bf16.mxu0 %v2760_v1  ;;  %v2765_v4 = vld [vmem:[%s3548_s30 + $0x8] ss:$16 sps:$4 sm:$0xff]   ;;  %1975 = vmatprep.subr.bf16.mxu1 %v2762_v2  ;;  %v2766_v5 = vld [vmem:[%s3548_s30 + $0x24] ss:$16 sps:$4 sm:$0xff]   ;;  %v2768_v6 = vld [vmem:[%s3548_s30 + $0x2c] ss:$16 sps:$4 sm:$0xff]  }
  0x78   : > { %1804 = vmatpush1.bf16.msra.mxu0 %v2764_v3  ;;  %1976 = vmatpush1.bf16.msra.mxu1 %v2765_v4  ;;  %v2770_v7 = vld [vmem:[%s3548_s30 + $0x20] ss:$16 sps:$4 sm:$0xff]   ;;  %v2771_v8 = vld [vmem:[%s3548_s30 + $0x28] ss:$16 sps:$4 sm:$0xff]   ;;  %v2772_v9 = vld [vmem:[%s3548_s30 + $0x44] ss:$16 sps:$4 sm:$0xff]  }
  0x79   : > { %1805 = vmatprep.subr.bf16.mxu0 %v2766_v5  ;;  %1977 = vmatprep.subr.bf16.mxu1 %v2768_v6  ;;  %v2774_v10 = vld [vmem:[%s3548_s30 + $0x4c] ss:$16 sps:$4 sm:$0xff]   ;;  %v2776_v11 = vld [vmem:[%s3548_s30 + $0x40] ss:$16 sps:$4 sm:$0xff]   ;;  %v2777_v12 = vld [vmem:[%s3548_s30 + $0x48] ss:$16 sps:$4 sm:$0xff]  }
  0x7a   : > { %v2778_v13 = vld [vmem:[%s3548_s30 + $0x64] ss:$16 sps:$4 sm:$0xff]   ;;  %v2780_v14 = vld [vmem:[%s3548_s30 + $0x6c] ss:$16 sps:$4 sm:$0xff]   ;;  %v2782_v15 = vld [vmem:[%s3548_s30 + $0x60] ss:$16 sps:$4 sm:$0xff]  }
  0x7b   : > { %v2783_v16 = vld [vmem:[%s3548_s30 + $0x68] ss:$16 sps:$4 sm:$0xff]   ;;  %v2784_v17 = vld [vmem:[%s3548_s30 + $0x84] ss:$16 sps:$4 sm:$0xff]   ;;  %v2786_v18 = vld [vmem:[%s3548_s30 + $0x8c] ss:$16 sps:$4 sm:$0xff]  }
  0x7c   : > { %1806 = vmatpush1.bf16.msra.mxu0 %v2770_v7  ;;  %1978 = vmatpush1.bf16.msra.mxu1 %v2771_v8  ;;  %v2788_v19 = vld [vmem:[%s3548_s30 + $0x80] ss:$16 sps:$4 sm:$0xff]   ;;  %v2789_v20 = vld [vmem:[%s3548_s30 + $0x88] ss:$16 sps:$4 sm:$0xff]   ;;  %v2790_v21 = vld [vmem:[%s3548_s30 + $0xa4] ss:$16 sps:$4 sm:$0xff]  }
  0x7d   : > { %1807 = vmatprep.subr.bf16.mxu0 %v2772_v9  ;;  %1979 = vmatprep.subr.bf16.mxu1 %v2774_v10  ;;  %v2792_v22 = vld [vmem:[%s3548_s30 + $0xac] ss:$16 sps:$4 sm:$0xff]   ;;  %v2794_v23 = vld [vmem:[%s3548_s30 + $0xa0] ss:$16 sps:$4 sm:$0xff]   ;;  %v2795_v24 = vld [vmem:[%s3548_s30 + $0xa8] ss:$16 sps:$4 sm:$0xff]  }
  0x7e   : > { %v2796_v25 = vld [vmem:[%s3548_s30 + $0xc4] ss:$16 sps:$4 sm:$0xff]   ;;  %v2798_v26 = vld [vmem:[%s3548_s30 + $0xcc] ss:$16 sps:$4 sm:$0xff]   ;;  %v2800_v27 = vld [vmem:[%s3548_s30 + $0xc0] ss:$16 sps:$4 sm:$0xff]  }
  0x7f   : > { %v2801_v28 = vld [vmem:[%s3548_s30 + $0xc8] ss:$16 sps:$4 sm:$0xff]   ;;  %v2802_v29 = vld [vmem:[%s3548_s30 + $0xe4] ss:$16 sps:$4 sm:$0xff]   ;;  %v2804_v30 = vld [vmem:[%s3548_s30 + $0xec] ss:$16 sps:$4 sm:$0xff]  }
  0x80   : > { %1808 = vmatpush1.bf16.msra.mxu0 %v2776_v11  ;;  %1980 = vmatpush1.bf16.msra.mxu1 %v2777_v12  ;;  %v2806_v31 = vld [vmem:[%s3548_s30 + $0xe0] ss:$16 sps:$4 sm:$0xff]   ;;  %v2807_v32 = vld [vmem:[%s3548_s30 + $0xe8] ss:$16 sps:$4 sm:$0xff]   ;;  %v2808_v33 = vld [vmem:[%s3548_s30 + $0x104] ss:$16 sps:$4 sm:$0xff]  }
  0x81   : > { %1809 = vmatprep.subr.bf16.mxu0 %v2778_v13  ;;  %1981 = vmatprep.subr.bf16.mxu1 %v2780_v14  ;;  %v2810_v34 = vld [vmem:[%s3548_s30 + $0x10c] ss:$16 sps:$4 sm:$0xff]   ;;  %v2812_v35 = vld [vmem:[%s3548_s30 + $0x100] ss:$16 sps:$4 sm:$0xff]   ;;  %v2813_v36 = vld [vmem:[%s3548_s30 + $0x108] ss:$16 sps:$4 sm:$0xff]  }
  0x82   : > { %v2814_v37 = vld [vmem:[%s3548_s30 + $0x124] ss:$16 sps:$4 sm:$0xff]   ;;  %v2816_v38 = vld [vmem:[%s3548_s30 + $0x12c] ss:$16 sps:$4 sm:$0xff]   ;;  %v2818_v39 = vld [vmem:[%s3548_s30 + $0x120] ss:$16 sps:$4 sm:$0xff]  }
  0x83   : > { %v2819_v40 = vld [vmem:[%s3548_s30 + $0x128] ss:$16 sps:$4 sm:$0xff]   ;;  %v2820_v41 = vld [vmem:[%s3548_s30 + $0x144] ss:$16 sps:$4 sm:$0xff]   ;;  %s2610_s23 = sshll.u32 %s3312_s15, 6  ;;  %p2599_p4 = scmp.ne.s32.totalorder %s3312_s15, 1 }
  0x84   : > { %1810 = vmatpush1.bf16.msra.mxu0 %v2782_v15  ;;  %1982 = vmatpush1.bf16.msra.mxu1 %v2783_v16  ;;  %v2822_v42 = vld [vmem:[%s3548_s30 + $0x14c] ss:$16 sps:$4 sm:$0xff]   ;;  %v2824_v43 = vld [vmem:[%s3548_s30 + $0x140] ss:$16 sps:$4 sm:$0xff]   ;;  %v2825_v44 = vld [vmem:[%s3548_s30 + $0x148] ss:$16 sps:$4 sm:$0xff]  }
  0x85   : > { %1811 = vmatprep.subr.bf16.mxu0 %v2784_v17  ;;  %1983 = vmatprep.subr.bf16.mxu1 %v2786_v18  ;;  %v2826_v45 = vld [vmem:[%s3548_s30 + $0x164] ss:$16 sps:$4 sm:$0xff]   ;;  %v2828_v46 = vld [vmem:[%s3548_s30 + $0x16c] ss:$16 sps:$4 sm:$0xff]   ;;  %s3607_s26 = scalar_lea.vmem [#allocation3], %s2610_s23 }
  0x86   : > { %v211_v47 = vld [vmem:[%s3607_s26] sm:$0xff]  ;;  %v2831_v50 = vld [vmem:[%s3548_s30 + $0x168] ss:$16 sps:$4 sm:$0xff]   ;;  %v2834_v53 = vld [vmem:[%s3548_s30 + $0x18c] ss:$16 sps:$4 sm:$0xff]  }
  0x87   : > { %v215_v48 = vld [vmem:[%s3607_s26 + $0x20] sm:$0xff]  ;;  %v2837_v55 = vld [vmem:[%s3548_s30 + $0x188] ss:$16 sps:$4 sm:$0xff]   ;;  %v2840_v57 = vld [vmem:[%s3548_s30 + $0x1ac] ss:$16 sps:$4 sm:$0xff]  }
  0x88   : > { %1812 = vmatpush1.bf16.msra.mxu0 %v2788_v19  ;;  %1984 = vmatpush1.bf16.msra.mxu1 %v2789_v20  ;;  %v2830_v49 = vld [vmem:[%s3548_s30 + $0x160] ss:$16 sps:$4 sm:$0xff]   ;;  %v2336_v51 = vcombine.high %v211_v47, %v215_v48  ;;  %v2832_v52 = vld [vmem:[%s3548_s30 + $0x184] ss:$16 sps:$4 sm:$0xff]   ;;  %v2843_v59 = vld [vmem:[%s3548_s30 + $0x1a8] ss:$16 sps:$4 sm:$0xff]   ;;  %v2335_v6 = vcombine.low %v211_v47, %v215_v48 }
  0x89   : > { %1813 = vmatprep.subr.bf16.mxu0 %v2790_v21  ;;  %1985 = vmatprep.subr.bf16.mxu1 %v2792_v22  ;;  %v2836_v54 = vld [vmem:[%s3548_s30 + $0x180] ss:$16 sps:$4 sm:$0xff]   ;;  %v2838_v56 = vld [vmem:[%s3548_s30 + $0x1a4] ss:$16 sps:$4 sm:$0xff]   ;;  %v2846_v61 = vld [vmem:[%s3548_s30 + $0x1cc] ss:$16 sps:$4 sm:$0xff]  }
  0x8a   : > { %1835 = vmatprep.mubr.bf16.mxu0 %v2336_v51  ;;  %2007 = vmatprep.mubr.bf16.mxu1 %v2336_v51  ;;  %v2842_v58 = vld [vmem:[%s3548_s30 + $0x1a0] ss:$16 sps:$4 sm:$0xff]   ;;  %v2844_v60 = vld [vmem:[%s3548_s30 + $0x1c4] ss:$16 sps:$4 sm:$0xff]   ;;  %v2849_v63 = vld [vmem:[%s3548_s30 + $0x1c8] ss:$16 sps:$4 sm:$0xff]  }
  0x8b   : > { %v2848_v62 = vld [vmem:[%s3548_s30 + $0x1c0] ss:$16 sps:$4 sm:$0xff]   ;;  %v2850_v0 = vld [vmem:[%s3548_s30 + $0x1e4] ss:$16 sps:$4 sm:$0xff]   ;;  %v2852_v1 = vld [vmem:[%s3548_s30 + $0x1ec] ss:$16 sps:$4 sm:$0xff]  }
  0x8c   : > { %1814 = vmatpush1.bf16.msra.mxu0 %v2794_v23  ;;  %1986 = vmatpush1.bf16.msra.mxu1 %v2795_v24  ;;  %v2854_v2 = vld [vmem:[%s3548_s30 + $0x1e0] ss:$16 sps:$4 sm:$0xff]   ;;  %v2855_v3 = vld [vmem:[%s3548_s30 + $0x1e8] ss:$16 sps:$4 sm:$0xff]   ;;  %v2858_v4 = vld [vmem:[%s3548_s30 + $0x204] ss:$16 sps:$4 sm:$0xff]  }
  0x8d   : > { %1815 = vmatprep.subr.bf16.mxu0 %v2796_v25  ;;  %1987 = vmatprep.subr.bf16.mxu1 %v2798_v26  ;;  %v2861_v5 = vld [vmem:[%s3548_s30 + $0x20c] ss:$16 sps:$4 sm:$0xff]   ;;  %v2856_v7 = vld [vmem:[%s3548_s30 + $0x200] ss:$16 sps:$4 sm:$0xff]   ;;  %v2859_v8 = vld [vmem:[%s3548_s30 + $0x208] ss:$16 sps:$4 sm:$0xff]  }
  0x8e   : > { %v2864_v9 = vld [vmem:[%s3548_s30 + $0x224] ss:$16 sps:$4 sm:$0xff]   ;;  %v2867_v10 = vld [vmem:[%s3548_s30 + $0x22c] ss:$16 sps:$4 sm:$0xff]   ;;  %v2862_v11 = vld [vmem:[%s3548_s30 + $0x220] ss:$16 sps:$4 sm:$0xff]  }
  0x8f   : > { %v2865_v12 = vld [vmem:[%s3548_s30 + $0x228] ss:$16 sps:$4 sm:$0xff]   ;;  %v2870_v13 = vld [vmem:[%s3548_s30 + $0x244] ss:$16 sps:$4 sm:$0xff]   ;;  %v2873_v14 = vld [vmem:[%s3548_s30 + $0x24c] ss:$16 sps:$4 sm:$0xff]  }
  0x90   : > { %1816 = vmatpush1.bf16.msra.mxu0 %v2800_v27  ;;  %1988 = vmatpush1.bf16.msra.mxu1 %v2801_v28  ;;  %v2868_v15 = vld [vmem:[%s3548_s30 + $0x240] ss:$16 sps:$4 sm:$0xff]   ;;  %v2871_v16 = vld [vmem:[%s3548_s30 + $0x248] ss:$16 sps:$4 sm:$0xff]   ;;  %v2876_v17 = vld [vmem:[%s3548_s30 + $0x264] ss:$16 sps:$4 sm:$0xff]  }
  0x91   : > { %1817 = vmatprep.subr.bf16.mxu0 %v2802_v29  ;;  %1989 = vmatprep.subr.bf16.mxu1 %v2804_v30  ;;  %v2879_v18 = vld [vmem:[%s3548_s30 + $0x26c] ss:$16 sps:$4 sm:$0xff]   ;;  %v2874_v19 = vld [vmem:[%s3548_s30 + $0x260] ss:$16 sps:$4 sm:$0xff]   ;;  %v2877_v20 = vld [vmem:[%s3548_s30 + $0x268] ss:$16 sps:$4 sm:$0xff]  }
  0x92   : > { %v2882_v21 = vld [vmem:[%s3548_s30 + $0x284] ss:$16 sps:$4 sm:$0xff]   ;;  %v2885_v22 = vld [vmem:[%s3548_s30 + $0x28c] ss:$16 sps:$4 sm:$0xff]   ;;  %v2880_v23 = vld [vmem:[%s3548_s30 + $0x280] ss:$16 sps:$4 sm:$0xff]  }
  0x93   : > { %v2883_v24 = vld [vmem:[%s3548_s30 + $0x288] ss:$16 sps:$4 sm:$0xff]   ;;  %v2888_v25 = vld [vmem:[%s3548_s30 + $0x2a4] ss:$16 sps:$4 sm:$0xff]   ;;  %v2891_v26 = vld [vmem:[%s3548_s30 + $0x2ac] ss:$16 sps:$4 sm:$0xff]  }
  0x94   : > { %1818 = vmatpush1.bf16.msra.mxu0 %v2806_v31  ;;  %1990 = vmatpush1.bf16.msra.mxu1 %v2807_v32  ;;  %v2886_v27 = vld [vmem:[%s3548_s30 + $0x2a0] ss:$16 sps:$4 sm:$0xff]   ;;  %v2889_v28 = vld [vmem:[%s3548_s30 + $0x2a8] ss:$16 sps:$4 sm:$0xff]   ;;  %v2894_v29 = vld [vmem:[%s3548_s30 + $0x2c4] ss:$16 sps:$4 sm:$0xff]  }
  0x95   : > { %1819 = vmatprep.subr.bf16.mxu0 %v2808_v33  ;;  %1991 = vmatprep.subr.bf16.mxu1 %v2810_v34  ;;  %v2897_v30 = vld [vmem:[%s3548_s30 + $0x2cc] ss:$16 sps:$4 sm:$0xff]   ;;  %v2892_v33 = vld [vmem:[%s3548_s30 + $0x2c0] ss:$16 sps:$4 sm:$0xff]   ;;  %v2895_v34 = vld [vmem:[%s3548_s30 + $0x2c8] ss:$16 sps:$4 sm:$0xff]  }
  0x96   : > { %v3656_v31 = vld [vmem:[%s3607_s26 + $0x8] sm:$0xff]  ;;  %v2918_v48 = vld [vmem:[%s3548_s30 + $0x344] ss:$16 sps:$4 sm:$0xff]  }
  0x97   : > { %v3659_v32 = vld [vmem:[%s3607_s26 + $0x28] sm:$0xff] }
  0x98   : > { %1820 = vmatpush1.bf16.msra.mxu0 %v2812_v35  ;;  %1992 = vmatpush1.bf16.msra.mxu1 %v2813_v36  ;;  %v2338_v35 = vcombine.high %v3656_v31, %v3659_v32  ;;  %v2900_v36 = vld [vmem:[%s3548_s30 + $0x2e4] ss:$16 sps:$4 sm:$0xff]   ;;  %v2913_v47 = vld [vmem:[%s3548_s30 + $0x328] ss:$16 sps:$4 sm:$0xff]  }
  0x99   : > { %1821 = vmatprep.subr.bf16.mxu0 %v2814_v37  ;;  %1993 = vmatprep.subr.bf16.mxu1 %v2816_v38  ;;  %v2903_v37 = vld [vmem:[%s3548_s30 + $0x2ec] ss:$16 sps:$4 sm:$0xff]   ;;  %v2898_v38 = vld [vmem:[%s3548_s30 + $0x2e0] ss:$16 sps:$4 sm:$0xff]   ;;  %v2919_v51 = vld [vmem:[%s3548_s30 + $0x348] ss:$16 sps:$4 sm:$0xff]  }
  0x9c   : > { %1822 = vmatpush1.bf16.msra.mxu0 %v2818_v39  ;;  %1994 = vmatpush1.bf16.msra.mxu1 %v2819_v40  ;;  %v2901_v39 = vld [vmem:[%s3548_s30 + $0x2e8] ss:$16 sps:$4 sm:$0xff]   ;;  %v2906_v40 = vld [vmem:[%s3548_s30 + $0x304] ss:$16 sps:$4 sm:$0xff]  }
  0x9d   : > { %1823 = vmatprep.subr.bf16.mxu0 %v2820_v41  ;;  %1995 = vmatprep.subr.bf16.mxu1 %v2822_v42  ;;  %v2909_v41 = vld [vmem:[%s3548_s30 + $0x30c] ss:$16 sps:$4 sm:$0xff]   ;;  %v2904_v42 = vld [vmem:[%s3548_s30 + $0x300] ss:$16 sps:$4 sm:$0xff]  }
  0xa0   : > { %1824 = vmatpush1.bf16.msra.mxu0 %v2824_v43  ;;  %1996 = vmatpush1.bf16.msra.mxu1 %v2825_v44  ;;  %v2907_v43 = vld [vmem:[%s3548_s30 + $0x308] ss:$16 sps:$4 sm:$0xff]   ;;  %v2912_v44 = vld [vmem:[%s3548_s30 + $0x324] ss:$16 sps:$4 sm:$0xff]  }
  0xa1   : > { %1825 = vmatprep.subr.bf16.mxu0 %v2826_v45  ;;  %1997 = vmatprep.subr.bf16.mxu1 %v2828_v46  ;;  %v2915_v45 = vld [vmem:[%s3548_s30 + $0x32c] ss:$16 sps:$4 sm:$0xff]   ;;  %v2910_v46 = vld [vmem:[%s3548_s30 + $0x320] ss:$16 sps:$4 sm:$0xff]  }
  0xa4   : > { %1826 = vmatpush1.bf16.msra.mxu0 %v2830_v49  ;;  %1998 = vmatpush1.bf16.msra.mxu1 %v2831_v50  ;;  %v2921_v49 = vld [vmem:[%s3548_s30 + $0x34c] ss:$16 sps:$4 sm:$0xff]   ;;  %v2916_v50 = vld [vmem:[%s3548_s30 + $0x340] ss:$16 sps:$4 sm:$0xff]  }
  0xa5   : > { %1827 = vmatprep.subr.bf16.mxu0 %v2832_v52  ;;  %1999 = vmatprep.subr.bf16.mxu1 %v2834_v53  ;;  %v2924_v52 = vld [vmem:[%s3548_s30 + $0x364] ss:$16 sps:$4 sm:$0xff]   ;;  %v2927_v53 = vld [vmem:[%s3548_s30 + $0x36c] ss:$16 sps:$4 sm:$0xff]  }
  0xa8   : > { %1828 = vmatpush1.bf16.msra.mxu0 %v2836_v54  ;;  %2000 = vmatpush1.bf16.msra.mxu1 %v2837_v55  ;;  %v2922_v54 = vld [vmem:[%s3548_s30 + $0x360] ss:$16 sps:$4 sm:$0xff]   ;;  %v2925_v55 = vld [vmem:[%s3548_s30 + $0x368] ss:$16 sps:$4 sm:$0xff]  }
  0xa9   : > { %1829 = vmatprep.subr.bf16.mxu0 %v2838_v56  ;;  %2001 = vmatprep.subr.bf16.mxu1 %v2840_v57  ;;  %v2930_v56 = vld [vmem:[%s3548_s30 + $0x384] ss:$16 sps:$4 sm:$0xff]   ;;  %v2933_v57 = vld [vmem:[%s3548_s30 + $0x38c] ss:$16 sps:$4 sm:$0xff]  }
  0xac   : > { %1830 = vmatpush1.bf16.msra.mxu0 %v2842_v58  ;;  %2002 = vmatpush1.bf16.msra.mxu1 %v2843_v59  ;;  %v2928_v58 = vld [vmem:[%s3548_s30 + $0x380] ss:$16 sps:$4 sm:$0xff]   ;;  %v2931_v59 = vld [vmem:[%s3548_s30 + $0x388] ss:$16 sps:$4 sm:$0xff]  }
  0xad   : > { %1831 = vmatprep.subr.bf16.mxu0 %v2844_v60  ;;  %2003 = vmatprep.subr.bf16.mxu1 %v2846_v61  ;;  %v2936_v60 = vld [vmem:[%s3548_s30 + $0x3a4] ss:$16 sps:$4 sm:$0xff]   ;;  %v2939_v61 = vld [vmem:[%s3548_s30 + $0x3ac] ss:$16 sps:$4 sm:$0xff]  }
  0xb0   : > { %1832 = vmatpush1.bf16.msra.mxu0 %v2848_v62  ;;  %2004 = vmatpush1.bf16.msra.mxu1 %v2849_v63  ;;  %v2934_v62 = vld [vmem:[%s3548_s30 + $0x3a0] ss:$16 sps:$4 sm:$0xff]   ;;  %v2937_v63 = vld [vmem:[%s3548_s30 + $0x3a8] ss:$16 sps:$4 sm:$0xff]  }
  0xb1   : > { %1833 = vmatprep.subr.bf16.mxu0 %v2850_v0  ;;  %2005 = vmatprep.subr.bf16.mxu1 %v2852_v1  ;;  %v2942_v0 = vld [vmem:[%s3548_s30 + $0x3c4] ss:$16 sps:$4 sm:$0xff]   ;;  %v2945_v1 = vld [vmem:[%s3548_s30 + $0x3cc] ss:$16 sps:$4 sm:$0xff]  }
  0xb4   : > { %1834 = vmatpush1.bf16.msra.mxu0 %v2854_v2  ;;  %2006 = vmatpush1.bf16.msra.mxu1 %v2855_v3  ;;  %v2940_v2 = vld [vmem:[%s3548_s30 + $0x3c0] ss:$16 sps:$4 sm:$0xff]   ;;  %v2943_v3 = vld [vmem:[%s3548_s30 + $0x3c8] ss:$16 sps:$4 sm:$0xff]  }
  0xb5   : > { %1846 = vmatprep.subr.bf16.mxu0 %v2858_v4  ;;  %2018 = vmatprep.subr.bf16.mxu1 %v2861_v5  ;;  %v2948_v4 = vld [vmem:[%s3548_s30 + $0x3e4] ss:$16 sps:$4 sm:$0xff]   ;;  %v2951_v5 = vld [vmem:[%s3548_s30 + $0x3ec] ss:$16 sps:$4 sm:$0xff]  }
  0xb7   : > { %1836 = vmatmul.mubr.bf16.vlgmr.msra.gmra.mrb[0].mxu0 %v2335_v6  ;;  %2008 = vmatmul.mubr.bf16.vlgmr.msra.gmra.mrb[0].mxu1 %v2335_v6  ;;  %v2946_v6 = vld [vmem:[%s3548_s30 + $0x3e0] ss:$16 sps:$4 sm:$0xff]  }
  0xb8   : > { %1847 = vmatpush1.bf16.msra.mxu0 %v2856_v7  ;;  %2019 = vmatpush1.bf16.msra.mxu1 %v2859_v8  ;;  %v2949_v7 = vld [vmem:[%s3548_s30 + $0x3e8] ss:$16 sps:$4 sm:$0xff]   ;;  %v2954_v8 = vld [vmem:[%s3548_s30 + $0x404] ss:$16 sps:$4 sm:$0xff]  }
  0xb9   : > { %1848 = vmatprep.subr.bf16.mxu0 %v2864_v9  ;;  %2020 = vmatprep.subr.bf16.mxu1 %v2867_v10  ;;  %v2957_v9 = vld [vmem:[%s3548_s30 + $0x40c] ss:$16 sps:$4 sm:$0xff]   ;;  %v2337_v10 = vcombine.low %v3656_v31, %v3659_v32  ;;  %v2979_v31 = vld [vmem:[%s3548_s30 + $0x488] ss:$16 sps:$4 sm:$0xff]   ;;  %v2984_v32 = vld [vmem:[%s3548_s30 + $0x4a4] ss:$16 sps:$4 sm:$0xff]  }
  0xba   : > { %1878 = vmatprep.mubr.bf16.mxu0 %v2338_v35  ;;  %2050 = vmatprep.mubr.bf16.mxu1 %v2338_v35  ;;  %v2985_v35 = vld [vmem:[%s3548_s30 + $0x4a8] ss:$16 sps:$4 sm:$0xff]  }
  0xbc   : > { %1849 = vmatpush1.bf16.msra.mxu0 %v2862_v11  ;;  %2021 = vmatpush1.bf16.msra.mxu1 %v2865_v12  ;;  %v2952_v11 = vld [vmem:[%s3548_s30 + $0x400] ss:$16 sps:$4 sm:$0xff]   ;;  %v2955_v12 = vld [vmem:[%s3548_s30 + $0x408] ss:$16 sps:$4 sm:$0xff]  }
  0xbd   : > { %1850 = vmatprep.subr.bf16.mxu0 %v2870_v13  ;;  %2022 = vmatprep.subr.bf16.mxu1 %v2873_v14  ;;  %v2960_v13 = vld [vmem:[%s3548_s30 + $0x424] ss:$16 sps:$4 sm:$0xff]   ;;  %v2963_v14 = vld [vmem:[%s3548_s30 + $0x42c] ss:$16 sps:$4 sm:$0xff]  }
  0xc0   : > { %1851 = vmatpush1.bf16.msra.mxu0 %v2868_v15  ;;  %2023 = vmatpush1.bf16.msra.mxu1 %v2871_v16  ;;  %v3710_v15 = vld [vmem:[%s3607_s26 + $0x10] sm:$0xff] }
  0xc1   : > { %1852 = vmatprep.subr.bf16.mxu0 %v2876_v17  ;;  %2024 = vmatprep.subr.bf16.mxu1 %v2879_v18  ;;  %v3713_v16 = vld [vmem:[%s3607_s26 + $0x30] sm:$0xff] }
  0xc2   : > { %v2340_v17 = vcombine.high %v3710_v15, %v3713_v16  ;;  %v2958_v18 = vld [vmem:[%s3548_s30 + $0x420] ss:$16 sps:$4 sm:$0xff]  }
  0xc4   : > { %1853 = vmatpush1.bf16.msra.mxu0 %v2874_v19  ;;  %2025 = vmatpush1.bf16.msra.mxu1 %v2877_v20  ;;  %v2961_v19 = vld [vmem:[%s3548_s30 + $0x428] ss:$16 sps:$4 sm:$0xff]   ;;  %v2966_v20 = vld [vmem:[%s3548_s30 + $0x444] ss:$16 sps:$4 sm:$0xff]  }
  0xc5   : > { %1854 = vmatprep.subr.bf16.mxu0 %v2882_v21  ;;  %2026 = vmatprep.subr.bf16.mxu1 %v2885_v22  ;;  %v2969_v21 = vld [vmem:[%s3548_s30 + $0x44c] ss:$16 sps:$4 sm:$0xff]   ;;  %v2964_v22 = vld [vmem:[%s3548_s30 + $0x440] ss:$16 sps:$4 sm:$0xff]  }
  0xc8   : > { %1855 = vmatpush1.bf16.msra.mxu0 %v2880_v23  ;;  %2027 = vmatpush1.bf16.msra.mxu1 %v2883_v24  ;;  %v2967_v23 = vld [vmem:[%s3548_s30 + $0x448] ss:$16 sps:$4 sm:$0xff]   ;;  %v2972_v24 = vld [vmem:[%s3548_s30 + $0x464] ss:$16 sps:$4 sm:$0xff]  }
  0xc9   : > { %1856 = vmatprep.subr.bf16.mxu0 %v2888_v25  ;;  %2028 = vmatprep.subr.bf16.mxu1 %v2891_v26  ;;  %v2975_v25 = vld [vmem:[%s3548_s30 + $0x46c] ss:$16 sps:$4 sm:$0xff]   ;;  %v2970_v26 = vld [vmem:[%s3548_s30 + $0x460] ss:$16 sps:$4 sm:$0xff]  }
  0xcc   : > { %1857 = vmatpush1.bf16.msra.mxu0 %v2886_v27  ;;  %2029 = vmatpush1.bf16.msra.mxu1 %v2889_v28  ;;  %v2973_v27 = vld [vmem:[%s3548_s30 + $0x468] ss:$16 sps:$4 sm:$0xff]   ;;  %v2978_v28 = vld [vmem:[%s3548_s30 + $0x484] ss:$16 sps:$4 sm:$0xff]  }
  0xcd   : > { %1858 = vmatprep.subr.bf16.mxu0 %v2894_v29  ;;  %2030 = vmatprep.subr.bf16.mxu1 %v2897_v30  ;;  %v2981_v29 = vld [vmem:[%s3548_s30 + $0x48c] ss:$16 sps:$4 sm:$0xff]   ;;  %v2976_v30 = vld [vmem:[%s3548_s30 + $0x480] ss:$16 sps:$4 sm:$0xff]  }
  0xd0   : > { %1859 = vmatpush1.bf16.msra.mxu0 %v2892_v33  ;;  %2031 = vmatpush1.bf16.msra.mxu1 %v2895_v34  ;;  %v2987_v33 = vld [vmem:[%s3548_s30 + $0x4ac] ss:$16 sps:$4 sm:$0xff]   ;;  %v2982_v34 = vld [vmem:[%s3548_s30 + $0x4a0] ss:$16 sps:$4 sm:$0xff]  }
  0xd1   : > { %1860 = vmatprep.subr.bf16.mxu0 %v2900_v36  ;;  %2032 = vmatprep.subr.bf16.mxu1 %v2903_v37  ;;  %v2990_v36 = vld [vmem:[%s3548_s30 + $0x4c4] ss:$16 sps:$4 sm:$0xff]   ;;  %v2993_v37 = vld [vmem:[%s3548_s30 + $0x4cc] ss:$16 sps:$4 sm:$0xff]  }
  0xd4   : > { %1861 = vmatpush1.bf16.msra.mxu0 %v2898_v38  ;;  %2033 = vmatpush1.bf16.msra.mxu1 %v2901_v39  ;;  %v2988_v38 = vld [vmem:[%s3548_s30 + $0x4c0] ss:$16 sps:$4 sm:$0xff]   ;;  %v2991_v39 = vld [vmem:[%s3548_s30 + $0x4c8] ss:$16 sps:$4 sm:$0xff]  }
  0xd5   : > { %1862 = vmatprep.subr.bf16.mxu0 %v2906_v40  ;;  %2034 = vmatprep.subr.bf16.mxu1 %v2909_v41  ;;  %v2996_v40 = vld [vmem:[%s3548_s30 + $0x4e4] ss:$16 sps:$4 sm:$0xff]   ;;  %v2999_v41 = vld [vmem:[%s3548_s30 + $0x4ec] ss:$16 sps:$4 sm:$0xff]  }
  0xd8   : > { %1863 = vmatpush1.bf16.msra.mxu0 %v2904_v42  ;;  %2035 = vmatpush1.bf16.msra.mxu1 %v2907_v43  ;;  %v2994_v42 = vld [vmem:[%s3548_s30 + $0x4e0] ss:$16 sps:$4 sm:$0xff]   ;;  %v2997_v43 = vld [vmem:[%s3548_s30 + $0x4e8] ss:$16 sps:$4 sm:$0xff]  }
  0xd9   : > { %1864 = vmatprep.subr.bf16.mxu0 %v2912_v44  ;;  %2036 = vmatprep.subr.bf16.mxu1 %v2915_v45  ;;  %v3002_v44 = vld [vmem:[%s3548_s30 + $0x504] ss:$16 sps:$4 sm:$0xff]   ;;  %v3005_v45 = vld [vmem:[%s3548_s30 + $0x50c] ss:$16 sps:$4 sm:$0xff]  }
  0xdc   : > { %1865 = vmatpush1.bf16.msra.mxu0 %v2910_v46  ;;  %2037 = vmatpush1.bf16.msra.mxu1 %v2913_v47  ;;  %v3000_v46 = vld [vmem:[%s3548_s30 + $0x500] ss:$16 sps:$4 sm:$0xff]   ;;  %v3003_v47 = vld [vmem:[%s3548_s30 + $0x508] ss:$16 sps:$4 sm:$0xff]  }
  0xdd   : > { %1866 = vmatprep.subr.bf16.mxu0 %v2918_v48  ;;  %2038 = vmatprep.subr.bf16.mxu1 %v2921_v49  ;;  %v3008_v48 = vld [vmem:[%s3548_s30 + $0x524] ss:$16 sps:$4 sm:$0xff]   ;;  %v3011_v49 = vld [vmem:[%s3548_s30 + $0x52c] ss:$16 sps:$4 sm:$0xff]  }
  0xe0   : > { %1867 = vmatpush1.bf16.msra.mxu0 %v2916_v50  ;;  %2039 = vmatpush1.bf16.msra.mxu1 %v2919_v51  ;;  %v3006_v50 = vld [vmem:[%s3548_s30 + $0x520] ss:$16 sps:$4 sm:$0xff]   ;;  %v3009_v51 = vld [vmem:[%s3548_s30 + $0x528] ss:$16 sps:$4 sm:$0xff]  }
  0xe1   : > { %1868 = vmatprep.subr.bf16.mxu0 %v2924_v52  ;;  %2040 = vmatprep.subr.bf16.mxu1 %v2927_v53  ;;  %v3014_v52 = vld [vmem:[%s3548_s30 + $0x544] ss:$16 sps:$4 sm:$0xff]   ;;  %v3017_v53 = vld [vmem:[%s3548_s30 + $0x54c] ss:$16 sps:$4 sm:$0xff]  }
  0xe4   : > { %1869 = vmatpush1.bf16.msra.mxu0 %v2922_v54  ;;  %2041 = vmatpush1.bf16.msra.mxu1 %v2925_v55  ;;  %v3012_v54 = vld [vmem:[%s3548_s30 + $0x540] ss:$16 sps:$4 sm:$0xff]   ;;  %v3015_v55 = vld [vmem:[%s3548_s30 + $0x548] ss:$16 sps:$4 sm:$0xff]  }
  0xe5   : > { %1870 = vmatprep.subr.bf16.mxu0 %v2930_v56  ;;  %2042 = vmatprep.subr.bf16.mxu1 %v2933_v57  ;;  %v3020_v56 = vld [vmem:[%s3548_s30 + $0x564] ss:$16 sps:$4 sm:$0xff]   ;;  %v3023_v57 = vld [vmem:[%s3548_s30 + $0x56c] ss:$16 sps:$4 sm:$0xff]  }
  0xe8   : > { %1871 = vmatpush1.bf16.msra.mxu0 %v2928_v58  ;;  %2043 = vmatpush1.bf16.msra.mxu1 %v2931_v59  ;;  %v3018_v58 = vld [vmem:[%s3548_s30 + $0x560] ss:$16 sps:$4 sm:$0xff]   ;;  %v3021_v59 = vld [vmem:[%s3548_s30 + $0x568] ss:$16 sps:$4 sm:$0xff]  }
  0xe9   : > { %1872 = vmatprep.subr.bf16.mxu0 %v2936_v60  ;;  %2044 = vmatprep.subr.bf16.mxu1 %v2939_v61  ;;  %v3026_v60 = vld [vmem:[%s3548_s30 + $0x584] ss:$16 sps:$4 sm:$0xff]   ;;  %v3029_v61 = vld [vmem:[%s3548_s30 + $0x58c] ss:$16 sps:$4 sm:$0xff]  }
  0xec   : > { %1873 = vmatpush1.bf16.msra.mxu0 %v2934_v62  ;;  %2045 = vmatpush1.bf16.msra.mxu1 %v2937_v63  ;;  %v3024_v62 = vld [vmem:[%s3548_s30 + $0x580] ss:$16 sps:$4 sm:$0xff]   ;;  %v3027_v63 = vld [vmem:[%s3548_s30 + $0x588] ss:$16 sps:$4 sm:$0xff]  }
  0xed   : > { %1874 = vmatprep.subr.bf16.mxu0 %v2942_v0  ;;  %2046 = vmatprep.subr.bf16.mxu1 %v2945_v1  ;;  %v3032_v0 = vld [vmem:[%s3548_s30 + $0x5a4] ss:$16 sps:$4 sm:$0xff]   ;;  %v3035_v1 = vld [vmem:[%s3548_s30 + $0x5ac] ss:$16 sps:$4 sm:$0xff]  }
  0xf0   : > { %1875 = vmatpush1.bf16.msra.mxu0 %v2940_v2  ;;  %2047 = vmatpush1.bf16.msra.mxu1 %v2943_v3  ;;  %v3030_v2 = vld [vmem:[%s3548_s30 + $0x5a0] ss:$16 sps:$4 sm:$0xff]   ;;  %v3033_v3 = vld [vmem:[%s3548_s30 + $0x5a8] ss:$16 sps:$4 sm:$0xff]  }
  0xf1   : > { %1876 = vmatprep.subr.bf16.mxu0 %v2948_v4  ;;  %2048 = vmatprep.subr.bf16.mxu1 %v2951_v5  ;;  %v3038_v4 = vld [vmem:[%s3548_s30 + $0x5c4] ss:$16 sps:$4 sm:$0xff]   ;;  %v3041_v5 = vld [vmem:[%s3548_s30 + $0x5cc] ss:$16 sps:$4 sm:$0xff]  }
  0xf4   : > { %1877 = vmatpush1.bf16.msra.mxu0 %v2946_v6  ;;  %2049 = vmatpush1.bf16.msra.mxu1 %v2949_v7  ;;  %v3036_v6 = vld [vmem:[%s3548_s30 + $0x5c0] ss:$16 sps:$4 sm:$0xff]   ;;  %v3039_v7 = vld [vmem:[%s3548_s30 + $0x5c8] ss:$16 sps:$4 sm:$0xff]  }
  0xf5   : > { %1889 = vmatprep.subr.bf16.mxu0 %v2954_v8  ;;  %2061 = vmatprep.subr.bf16.mxu1 %v2957_v9  ;;  %v3044_v8 = vld [vmem:[%s3548_s30 + $0x5e4] ss:$16 sps:$4 sm:$0xff]   ;;  %v3047_v9 = vld [vmem:[%s3548_s30 + $0x5ec] ss:$16 sps:$4 sm:$0xff]  }
  0xf7   : > { %1879 = vmatmul.mubr.bf16.vlgmr.msra.gmra.mrb[0].mxu0 %v2337_v10  ;;  %2051 = vmatmul.mubr.bf16.vlgmr.msra.gmra.mrb[0].mxu1 %v2337_v10  ;;  %v3042_v10 = vld [vmem:[%s3548_s30 + $0x5e0] ss:$16 sps:$4 sm:$0xff]  }
  0xf8   : > { %1890 = vmatpush1.bf16.msra.mxu0 %v2952_v11  ;;  %2062 = vmatpush1.bf16.msra.mxu1 %v2955_v12  ;;  %v3045_v11 = vld [vmem:[%s3548_s30 + $0x5e8] ss:$16 sps:$4 sm:$0xff]   ;;  %v3050_v12 = vld [vmem:[%s3548_s30 + $0x604] ss:$16 sps:$4 sm:$0xff]  }
  0xf9   : > { %1891 = vmatprep.subr.bf16.mxu0 %v2960_v13  ;;  %2063 = vmatprep.subr.bf16.mxu1 %v2963_v14  ;;  %v3053_v13 = vld [vmem:[%s3548_s30 + $0x60c] ss:$16 sps:$4 sm:$0xff]   ;;  %v2339_v14 = vcombine.low %v3710_v15, %v3713_v16  ;;  %v3054_v16 = vld [vmem:[%s3548_s30 + $0x620] ss:$16 sps:$4 sm:$0xff]  }
  0xfa   : > { %1921 = vmatprep.mubr.bf16.mxu0 %v2340_v17  ;;  %2093 = vmatprep.mubr.bf16.mxu1 %v2340_v17  ;;  %v3780_v17 = vld [vmem:[%s3607_s26 + $0x18] sm:$0xff] }
  0xfc   : > { %1892 = vmatpush1.bf16.msra.mxu0 %v2958_v18  ;;  %2064 = vmatpush1.bf16.msra.mxu1 %v2961_v19  ;;  %v3783_v18 = vld [vmem:[%s3607_s26 + $0x38] sm:$0xff]  ;;  %v3048_v19 = vld [vmem:[%s3548_s30 + $0x600] ss:$16 sps:$4 sm:$0xff]  }
  0xfd   : > { %1893 = vmatprep.subr.bf16.mxu0 %v2966_v20  ;;  %2065 = vmatprep.subr.bf16.mxu1 %v2969_v21  ;;  %v3051_v20 = vld [vmem:[%s3548_s30 + $0x608] ss:$16 sps:$4 sm:$0xff]   ;;  %v3056_v21 = vld [vmem:[%s3548_s30 + $0x624] ss:$16 sps:$4 sm:$0xff]   ;;  %v2342_v15 = vcombine.high %v3780_v17, %v3783_v18 }
 0x100   : > { %1894 = vmatpush1.bf16.msra.mxu0 %v2964_v22  ;;  %2066 = vmatpush1.bf16.msra.mxu1 %v2967_v23  ;;  %v3059_v22 = vld [vmem:[%s3548_s30 + $0x62c] ss:$16 sps:$4 sm:$0xff]   ;;  %v3057_v23 = vld [vmem:[%s3548_s30 + $0x628] ss:$16 sps:$4 sm:$0xff]  }
 0x101   : > { %1895 = vmatprep.subr.bf16.mxu0 %v2972_v24  ;;  %2067 = vmatprep.subr.bf16.mxu1 %v2975_v25  ;;  %v3062_v24 = vld [vmem:[%s3548_s30 + $0x644] ss:$16 sps:$4 sm:$0xff]   ;;  %v3065_v25 = vld [vmem:[%s3548_s30 + $0x64c] ss:$16 sps:$4 sm:$0xff]  }
 0x104   : > { %1896 = vmatpush1.bf16.msra.mxu0 %v2970_v26  ;;  %2068 = vmatpush1.bf16.msra.mxu1 %v2973_v27  ;;  %v3060_v26 = vld [vmem:[%s3548_s30 + $0x640] ss:$16 sps:$4 sm:$0xff]   ;;  %v3063_v27 = vld [vmem:[%s3548_s30 + $0x648] ss:$16 sps:$4 sm:$0xff]  }
 0x105   : > { %1897 = vmatprep.subr.bf16.mxu0 %v2978_v28  ;;  %2069 = vmatprep.subr.bf16.mxu1 %v2981_v29  ;;  %v3068_v28 = vld [vmem:[%s3548_s30 + $0x664] ss:$16 sps:$4 sm:$0xff]   ;;  %v3071_v29 = vld [vmem:[%s3548_s30 + $0x66c] ss:$16 sps:$4 sm:$0xff]  }
 0x108   : > { %1898 = vmatpush1.bf16.msra.mxu0 %v2976_v30  ;;  %2070 = vmatpush1.bf16.msra.mxu1 %v2979_v31  ;;  %v3066_v30 = vld [vmem:[%s3548_s30 + $0x660] ss:$16 sps:$4 sm:$0xff]   ;;  %v3069_v31 = vld [vmem:[%s3548_s30 + $0x668] ss:$16 sps:$4 sm:$0xff]  }
 0x109   : > { %1899 = vmatprep.subr.bf16.mxu0 %v2984_v32  ;;  %2071 = vmatprep.subr.bf16.mxu1 %v2987_v33  ;;  %v3074_v32 = vld [vmem:[%s3548_s30 + $0x684] ss:$16 sps:$4 sm:$0xff]   ;;  %v3077_v33 = vld [vmem:[%s3548_s30 + $0x68c] ss:$16 sps:$4 sm:$0xff]  }
 0x10c   : > { %1900 = vmatpush1.bf16.msra.mxu0 %v2982_v34  ;;  %2072 = vmatpush1.bf16.msra.mxu1 %v2985_v35  ;;  %v3072_v34 = vld [vmem:[%s3548_s30 + $0x680] ss:$16 sps:$4 sm:$0xff]   ;;  %v3075_v35 = vld [vmem:[%s3548_s30 + $0x688] ss:$16 sps:$4 sm:$0xff]  }
 0x10d   : > { %1901 = vmatprep.subr.bf16.mxu0 %v2990_v36  ;;  %2073 = vmatprep.subr.bf16.mxu1 %v2993_v37  ;;  %v3080_v36 = vld [vmem:[%s3548_s30 + $0x6a4] ss:$16 sps:$4 sm:$0xff]   ;;  %v3083_v37 = vld [vmem:[%s3548_s30 + $0x6ac] ss:$16 sps:$4 sm:$0xff]  }
 0x110   : > { %1902 = vmatpush1.bf16.msra.mxu0 %v2988_v38  ;;  %2074 = vmatpush1.bf16.msra.mxu1 %v2991_v39  ;;  %v3078_v38 = vld [vmem:[%s3548_s30 + $0x6a0] ss:$16 sps:$4 sm:$0xff]   ;;  %v3081_v39 = vld [vmem:[%s3548_s30 + $0x6a8] ss:$16 sps:$4 sm:$0xff]  }
 0x111   : > { %1903 = vmatprep.subr.bf16.mxu0 %v2996_v40  ;;  %2075 = vmatprep.subr.bf16.mxu1 %v2999_v41  ;;  %v3086_v40 = vld [vmem:[%s3548_s30 + $0x6c4] ss:$16 sps:$4 sm:$0xff]   ;;  %v3089_v41 = vld [vmem:[%s3548_s30 + $0x6cc] ss:$16 sps:$4 sm:$0xff]  }
 0x114   : > { %1904 = vmatpush1.bf16.msra.mxu0 %v2994_v42  ;;  %2076 = vmatpush1.bf16.msra.mxu1 %v2997_v43  ;;  %v3084_v42 = vld [vmem:[%s3548_s30 + $0x6c0] ss:$16 sps:$4 sm:$0xff]   ;;  %v3087_v43 = vld [vmem:[%s3548_s30 + $0x6c8] ss:$16 sps:$4 sm:$0xff]  }
 0x115   : > { %1905 = vmatprep.subr.bf16.mxu0 %v3002_v44  ;;  %2077 = vmatprep.subr.bf16.mxu1 %v3005_v45  ;;  %v3092_v44 = vld [vmem:[%s3548_s30 + $0x6e4] ss:$16 sps:$4 sm:$0xff]   ;;  %v3095_v45 = vld [vmem:[%s3548_s30 + $0x6ec] ss:$16 sps:$4 sm:$0xff]  }
 0x118   : > { %1906 = vmatpush1.bf16.msra.mxu0 %v3000_v46  ;;  %2078 = vmatpush1.bf16.msra.mxu1 %v3003_v47  ;;  %v3090_v46 = vld [vmem:[%s3548_s30 + $0x6e0] ss:$16 sps:$4 sm:$0xff]   ;;  %v3093_v47 = vld [vmem:[%s3548_s30 + $0x6e8] ss:$16 sps:$4 sm:$0xff]  }
 0x119   : > { %1907 = vmatprep.subr.bf16.mxu0 %v3008_v48  ;;  %2079 = vmatprep.subr.bf16.mxu1 %v3011_v49  ;;  %v3098_v48 = vld [vmem:[%s3548_s30 + $0x704] ss:$16 sps:$4 sm:$0xff]   ;;  %v3101_v49 = vld [vmem:[%s3548_s30 + $0x70c] ss:$16 sps:$4 sm:$0xff]  }
 0x11c   : > { %1908 = vmatpush1.bf16.msra.mxu0 %v3006_v50  ;;  %2080 = vmatpush1.bf16.msra.mxu1 %v3009_v51  ;;  %v3096_v50 = vld [vmem:[%s3548_s30 + $0x700] ss:$16 sps:$4 sm:$0xff]   ;;  %v3099_v51 = vld [vmem:[%s3548_s30 + $0x708] ss:$16 sps:$4 sm:$0xff]  }
 0x11d   : > { %1909 = vmatprep.subr.bf16.mxu0 %v3014_v52  ;;  %2081 = vmatprep.subr.bf16.mxu1 %v3017_v53  ;;  %v3104_v52 = vld [vmem:[%s3548_s30 + $0x724] ss:$16 sps:$4 sm:$0xff]   ;;  %v3107_v53 = vld [vmem:[%s3548_s30 + $0x72c] ss:$16 sps:$4 sm:$0xff]  }
 0x120   : > { %1910 = vmatpush1.bf16.msra.mxu0 %v3012_v54  ;;  %2082 = vmatpush1.bf16.msra.mxu1 %v3015_v55  ;;  %v3102_v54 = vld [vmem:[%s3548_s30 + $0x720] ss:$16 sps:$4 sm:$0xff]   ;;  %v3105_v55 = vld [vmem:[%s3548_s30 + $0x728] ss:$16 sps:$4 sm:$0xff]  }
 0x121   : > { %1911 = vmatprep.subr.bf16.mxu0 %v3020_v56  ;;  %2083 = vmatprep.subr.bf16.mxu1 %v3023_v57  ;;  %v3110_v56 = vld [vmem:[%s3548_s30 + $0x744] ss:$16 sps:$4 sm:$0xff]   ;;  %v3113_v57 = vld [vmem:[%s3548_s30 + $0x74c] ss:$16 sps:$4 sm:$0xff]  }
 0x124   : > { %1912 = vmatpush1.bf16.msra.mxu0 %v3018_v58  ;;  %2084 = vmatpush1.bf16.msra.mxu1 %v3021_v59  ;;  %v3108_v58 = vld [vmem:[%s3548_s30 + $0x740] ss:$16 sps:$4 sm:$0xff]   ;;  %v3111_v59 = vld [vmem:[%s3548_s30 + $0x748] ss:$16 sps:$4 sm:$0xff]  }
 0x125   : > { %1913 = vmatprep.subr.bf16.mxu0 %v3026_v60  ;;  %2085 = vmatprep.subr.bf16.mxu1 %v3029_v61  ;;  %v3116_v60 = vld [vmem:[%s3548_s30 + $0x764] ss:$16 sps:$4 sm:$0xff]   ;;  %v3119_v61 = vld [vmem:[%s3548_s30 + $0x76c] ss:$16 sps:$4 sm:$0xff]  }
 0x128   : > { %1914 = vmatpush1.bf16.msra.mxu0 %v3024_v62  ;;  %2086 = vmatpush1.bf16.msra.mxu1 %v3027_v63  ;;  %v3114_v62 = vld [vmem:[%s3548_s30 + $0x760] ss:$16 sps:$4 sm:$0xff]   ;;  %v3117_v63 = vld [vmem:[%s3548_s30 + $0x768] ss:$16 sps:$4 sm:$0xff]  }
 0x129   : > { %1915 = vmatprep.subr.bf16.mxu0 %v3032_v0  ;;  %2087 = vmatprep.subr.bf16.mxu1 %v3035_v1  ;;  %v3122_v0 = vld [vmem:[%s3548_s30 + $0x784] ss:$16 sps:$4 sm:$0xff]   ;;  %v3125_v1 = vld [vmem:[%s3548_s30 + $0x78c] ss:$16 sps:$4 sm:$0xff]  }
 0x12c   : > { %1916 = vmatpush1.bf16.msra.mxu0 %v3030_v2  ;;  %2088 = vmatpush1.bf16.msra.mxu1 %v3033_v3  ;;  %v3120_v2 = vld [vmem:[%s3548_s30 + $0x780] ss:$16 sps:$4 sm:$0xff]   ;;  %v3123_v3 = vld [vmem:[%s3548_s30 + $0x788] ss:$16 sps:$4 sm:$0xff]  }
 0x12d   : > { %1917 = vmatprep.subr.bf16.mxu0 %v3038_v4  ;;  %2089 = vmatprep.subr.bf16.mxu1 %v3041_v5  ;;  %v3128_v4 = vld [vmem:[%s3548_s30 + $0x7a4] ss:$16 sps:$4 sm:$0xff]   ;;  %v3131_v5 = vld [vmem:[%s3548_s30 + $0x7ac] ss:$16 sps:$4 sm:$0xff]  }
 0x130   : > { %1918 = vmatpush1.bf16.msra.mxu0 %v3036_v6  ;;  %2090 = vmatpush1.bf16.msra.mxu1 %v3039_v7  ;;  %v3126_v6 = vld [vmem:[%s3548_s30 + $0x7a0] ss:$16 sps:$4 sm:$0xff]   ;;  %v3129_v7 = vld [vmem:[%s3548_s30 + $0x7a8] ss:$16 sps:$4 sm:$0xff]  }
 0x131   : > { %1919 = vmatprep.subr.bf16.mxu0 %v3044_v8  ;;  %2091 = vmatprep.subr.bf16.mxu1 %v3047_v9  ;;  %v3134_v8 = vld [vmem:[%s3548_s30 + $0x7c4] ss:$16 sps:$4 sm:$0xff]   ;;  %v3137_v9 = vld [vmem:[%s3548_s30 + $0x7cc] ss:$16 sps:$4 sm:$0xff]  }
 0x134   : > { %1920 = vmatpush1.bf16.msra.mxu0 %v3042_v10  ;;  %2092 = vmatpush1.bf16.msra.mxu1 %v3045_v11  ;;  %v3132_v10 = vld [vmem:[%s3548_s30 + $0x7c0] ss:$16 sps:$4 sm:$0xff]   ;;  %v3135_v11 = vld [vmem:[%s3548_s30 + $0x7c8] ss:$16 sps:$4 sm:$0xff]  }
 0x135   : > { %1932 = vmatprep.subr.bf16.mxu0 %v3050_v12  ;;  %2104 = vmatprep.subr.bf16.mxu1 %v3053_v13  ;;  %v3140_v12 = vld [vmem:[%s3548_s30 + $0x7e4] ss:$16 sps:$4 sm:$0xff]   ;;  %v3143_v13 = vld [vmem:[%s3548_s30 + $0x7ec] ss:$16 sps:$4 sm:$0xff]  }
 0x137   : > { %1922 = vmatmul.mubr.bf16.vlgmr.msra.gmra.mrb[0].mxu0 %v2339_v14  ;;  %2094 = vmatmul.mubr.bf16.vlgmr.msra.gmra.mrb[0].mxu1 %v2339_v14  ;;  %v3138_v14 = vld [vmem:[%s3548_s30 + $0x7e0] ss:$16 sps:$4 sm:$0xff]  }
 0x138   : > { %1933 = vmatpush1.bf16.msra.mxu0 %v3048_v19  ;;  %2105 = vmatpush1.bf16.msra.mxu1 %v3051_v20  ;;  %v3141_v19 = vld [vmem:[%s3548_s30 + $0x7e8] ss:$16 sps:$4 sm:$0xff]   ;;  %v2341_v20 = vcombine.low %v3780_v17, %v3783_v18 }
 0x139   : > { %1934 = vmatprep.subr.bf16.mxu0 %v3056_v21  ;;  %2106 = vmatprep.subr.bf16.mxu1 %v3059_v22  ;;  %v219_v21 = vld [vmem:[#allocation2] sm:$0xff]  ;;  %v221_v22 = vld [vmem:[#allocation2 + $0x10] sm:$0xff] }
 0x13a   : > { %1964 = vmatprep.mubr.bf16.mxu0 %v2342_v15  ;;  %2136 = vmatprep.mubr.bf16.mxu1 %v2342_v15  ;;  %v220_v15 = vld [vmem:[#allocation2 + $0x8] sm:$0xff] }
 0x13c   : > { %1935 = vmatpush1.bf16.msra.mxu0 %v3054_v16  ;;  %2107 = vmatpush1.bf16.msra.mxu1 %v3057_v23  ;;  %v222_v16 = vld [vmem:[#allocation2 + $0x18] sm:$0xff] }
 0x13d   : > { %1936 = vmatprep.subr.bf16.mxu0 %v3062_v24  ;;  %2108 = vmatprep.subr.bf16.mxu1 %v3065_v25  ;;  %v223_v25 = vld [vmem:[#allocation2 + $0x20] sm:$0xff] }
 0x140   : > { %1937 = vmatpush1.bf16.msra.mxu0 %v3060_v26  ;;  %2109 = vmatpush1.bf16.msra.mxu1 %v3063_v27  ;;  %v225_v26 = vld [vmem:[#allocation2 + $0x30] sm:$0xff] }
 0x141   : > { %1938 = vmatprep.subr.bf16.mxu0 %v3068_v28  ;;  %2110 = vmatprep.subr.bf16.mxu1 %v3071_v29 }
 0x144   : > { %1939 = vmatpush1.bf16.msra.mxu0 %v3066_v30  ;;  %2111 = vmatpush1.bf16.msra.mxu1 %v3069_v31  ;;  %v224_v31 = vld [vmem:[#allocation2 + $0x28] sm:$0xff] }
 0x145   : > { %1940 = vmatprep.subr.bf16.mxu0 %v3074_v32  ;;  %2112 = vmatprep.subr.bf16.mxu1 %v3077_v33  ;;  %v226_v32 = vld [vmem:[#allocation2 + $0x38] sm:$0xff] }
 0x148   : > { %1941 = vmatpush1.bf16.msra.mxu0 %v3072_v34  ;;  %2113 = vmatpush1.bf16.msra.mxu1 %v3075_v35 }
 0x149   : > { %1942 = vmatprep.subr.bf16.mxu0 %v3080_v36  ;;  %2114 = vmatprep.subr.bf16.mxu1 %v3083_v37 }
 0x14c   : > { %1943 = vmatpush1.bf16.msra.mxu0 %v3078_v38  ;;  %2115 = vmatpush1.bf16.msra.mxu1 %v3081_v39 }
 0x14d   : > { %1944 = vmatprep.subr.bf16.mxu0 %v3086_v40  ;;  %2116 = vmatprep.subr.bf16.mxu1 %v3089_v41 }
 0x150   : > { %1945 = vmatpush1.bf16.msra.mxu0 %v3084_v42  ;;  %2117 = vmatpush1.bf16.msra.mxu1 %v3087_v43 }
 0x151   : > { %1946 = vmatprep.subr.bf16.mxu0 %v3092_v44  ;;  %2118 = vmatprep.subr.bf16.mxu1 %v3095_v45 }
 0x154   : > { %1947 = vmatpush1.bf16.msra.mxu0 %v3090_v46  ;;  %2119 = vmatpush1.bf16.msra.mxu1 %v3093_v47 }
 0x155   : > { %1948 = vmatprep.subr.bf16.mxu0 %v3098_v48  ;;  %2120 = vmatprep.subr.bf16.mxu1 %v3101_v49 }
 0x158   : > { %1949 = vmatpush1.bf16.msra.mxu0 %v3096_v50  ;;  %2121 = vmatpush1.bf16.msra.mxu1 %v3099_v51 }
 0x159   : > { %1950 = vmatprep.subr.bf16.mxu0 %v3104_v52  ;;  %2122 = vmatprep.subr.bf16.mxu1 %v3107_v53 }
 0x15c   : > { %1951 = vmatpush1.bf16.msra.mxu0 %v3102_v54  ;;  %2123 = vmatpush1.bf16.msra.mxu1 %v3105_v55 }
 0x15d   : > { %1952 = vmatprep.subr.bf16.mxu0 %v3110_v56  ;;  %2124 = vmatprep.subr.bf16.mxu1 %v3113_v57 }
 0x160   : > { %1953 = vmatpush1.bf16.msra.mxu0 %v3108_v58  ;;  %2125 = vmatpush1.bf16.msra.mxu1 %v3111_v59 }
 0x161   : > { %1954 = vmatprep.subr.bf16.mxu0 %v3116_v60  ;;  %2126 = vmatprep.subr.bf16.mxu1 %v3119_v61 }
 0x164   : > { %1955 = vmatpush1.bf16.msra.mxu0 %v3114_v62  ;;  %2127 = vmatpush1.bf16.msra.mxu1 %v3117_v63 }
 0x165   : > { %1956 = vmatprep.subr.bf16.mxu0 %v3122_v0  ;;  %2128 = vmatprep.subr.bf16.mxu1 %v3125_v1 }
 0x168   : > { %1957 = vmatpush1.bf16.msra.mxu0 %v3120_v2  ;;  %2129 = vmatpush1.bf16.msra.mxu1 %v3123_v3 }
 0x169   : > { %1958 = vmatprep.subr.bf16.mxu0 %v3128_v4  ;;  %2130 = vmatprep.subr.bf16.mxu1 %v3131_v5 }
 0x16c   : > { %1959 = vmatpush1.bf16.msra.mxu0 %v3126_v6  ;;  %2131 = vmatpush1.bf16.msra.mxu1 %v3129_v7 }
 0x16d   : > { %1960 = vmatprep.subr.bf16.mxu0 %v3134_v8  ;;  %2132 = vmatprep.subr.bf16.mxu1 %v3137_v9 }
 0x170   : > { %1961 = vmatpush1.bf16.msra.mxu0 %v3132_v10  ;;  %2133 = vmatpush1.bf16.msra.mxu1 %v3135_v11 }
 0x171   : > { %1962 = vmatprep.subr.bf16.mxu0 %v3140_v12  ;;  %2134 = vmatprep.subr.bf16.mxu1 %v3143_v13 }
 0x174   : > { %1963 = vmatpush1.bf16.msra.mxu0 %v3138_v14  ;;  %2135 = vmatpush1.bf16.msra.mxu1 %v3141_v19 }
 0x177   : > { %1965 = vmatmul.mubr.bf16.vlgmr.msra.gmra.mrb[0].mxu0 %v2341_v20  ;;  %2137 = vmatmul.mubr.bf16.vlgmr.msra.gmra.mrb[0].mxu1 %v2341_v20 }
 0x24a   : > { %v1966_v23 = vpop.f32.mrb[0].mxu0  ;;  %v2138_v24 = vpop.f32.mrb[0].mxu1  ;;  %2166 = sbr.rel (%p2599_p4) target bundleno = 603 (0x25b), region = 44 }
 0x24b   : > { %v2147_v27 = vadd.f32 %v1966_v23, %v219_v21  ;;  %v2149_v28 = vadd.f32 %v2138_v24, %v221_v22  ;;  %v1968_v29 = vpop.f32.mrb[1].mxu0  ;;  %v2140_v30 = vpop.f32.mrb[1].mxu1 }
 0x24c   : > { %v2148_v33 = vadd.f32 %v1968_v29, %v220_v15  ;;  %v2150_v17 = vadd.f32 %v2140_v30, %v222_v16  ;;  %v1970_v18 = vpop.f32.mrb[2].mxu0  ;;  %v2142_v34 = vpop.f32.mrb[2].mxu1 }
 0x24d   : > { %2155 = vst [vmem:[#allocation2] sm:$0xff] %v2147_v27  ;;  %2157 = vst [vmem:[#allocation2 + $0x10] sm:$0xff] %v2149_v28  ;;  %v2151_v35 = vadd.f32 %v1970_v18, %v223_v25  ;;  %v2153_v36 = vadd.f32 %v2142_v34, %v225_v26  ;;  %v1972_v37 = vpop.f32.mrb[3].mxu0  ;;  %v2144_v38 = vpop.f32.mrb[3].mxu1 }
 0x24e   : > { %2156 = vst [vmem:[#allocation2 + $0x8] sm:$0xff] %v2148_v33  ;;  %2158 = vst [vmem:[#allocation2 + $0x18] sm:$0xff] %v2150_v17  ;;  %v2152_v39 = vadd.f32 %v1972_v37, %v224_v31  ;;  %v2154_v40 = vadd.f32 %v2144_v38, %v226_v32 }
 0x24f   : > { %2159 = vst [vmem:[#allocation2 + $0x20] sm:$0xff] %v2151_v35  ;;  %2161 = vst [vmem:[#allocation2 + $0x30] sm:$0xff] %v2153_v36 }
 0x250   : > { %2160 = vst [vmem:[#allocation2 + $0x28] sm:$0xff] %v2152_v39  ;;  %2162 = vst [vmem:[#allocation2 + $0x38] sm:$0xff] %v2154_v40 }
 0x254   : > { %v2167_v41 = vld [vmem:[#allocation2] sm:$0xff]  ;;  %v2169_v43 = vld [vmem:[#allocation2 + $0x10] sm:$0xff] }
 0x255   : > { %v2168_v42 = vld [vmem:[#allocation2 + $0x8] sm:$0xff]  ;;  %v2170_v45 = vld [vmem:[#allocation2 + $0x18] sm:$0xff] }
 0x256   : > { %v2611_v44 = vpack.c.bf16 %v2168_v42, %v2167_v41  ;;  %v2171_v46 = vld [vmem:[#allocation2 + $0x20] sm:$0xff]  ;;  %v2612_v48 = vpack.c.bf16 %v2170_v45, %v2169_v43  ;;  %v2173_v50 = vld [vmem:[#allocation2 + $0x30] sm:$0xff] }
 0x257   : > { %v2172_v47 = vld [vmem:[#allocation2 + $0x28] sm:$0xff]  ;;  %v2174_v51 = vld [vmem:[#allocation2 + $0x38] sm:$0xff] }
 0x258   : > { %v2613_v49 = vpack.c.bf16 %v2172_v47, %v2171_v46  ;;  %2199 = vst [vmem:[%s3557_s5] sm:$0xff] %v2611_v44  ;;  %v2614_v52 = vpack.c.bf16 %v2174_v51, %v2173_v50  ;;  %2200 = vst [vmem:[%s3557_s5 + $0x8] sm:$0xff] %v2612_v48 }
 0x25a   : > { %2201 = vst [vmem:[%s3557_s5 + $0x10] sm:$0xff] %v2613_v49  ;;  %2202 = vst [vmem:[%s3557_s5 + $0x18] sm:$0xff] %v2614_v52 }
 0x25b PF: > { %s2615_s15 = sshll.u32 %s3316_s16, 9  ;;  %s2217_s25 = sshll.u32 %s3557_s5, 4  ;;  %s3863_s25 = int_to_ptr.vmem [resolvable:$true] %s2217_s25 }
 0x25c   : > { %s3860_s12 = scalar_lea.hbm %s3930_s2, %s2615_s15  ;;  %s3867_s24 = scalar_lea.sflag [#allocation5], %s191_s9 }
 0x25d   : > { %s3202_s22 = scalar_lea.vmem %s3863_s25, 512  ;;  %p3963_p3 = scmp.ne.s32.totalorder %s3947_s27, 0 }
 0x25e   : > { %p3203_p2 = scmp.ne.s32.totalorder %s3863_s25, %s3202_s22  ;;  %s3337_s16 = smov [#allocation8]  }
 0x25f   : > { %s3206_s0 = sshll.u32 %s3337_s16, 4  ;;  %s3207_s0 = int_to_ptr.vmem [resolvable:$false] %s3206_s0 }
 0x260   : > { %p3204_p6 = pnand %p3203_p2, %p3963_p3  ;;  %s3208_s28 = scalar_lea.vmem %s3207_s0, 1024 }
 0x261   : > { %p3209_p12 = scmp.lt.s32.totalorder %s3863_s25, %s3207_s0  ;;  %p3210_p0 = scmp.lt.s32.totalorder %s3208_s28, %s3202_s22 }
 0x262   : > { %p3205_p10 = pneg %p3204_p6 }
 0x263   : > { %p3211_p8 = por %p3210_p0, %p3209_p12 }
 0x265   : > { %p3212_p11 = pnand %p3211_p8, %p3205_p10 }
 0x267   : > { %3215 = shalt.err (!%p3212_p11)
}
 0x268   : > { %s3216_s6 = scalar_lea.hbm %s3860_s12, 512  ;;  %s3220_s30 = scalar_lea.hbm %s3930_s2, 1024 }
 0x269   : > { %p3217_p13 = scmp.ne.s32.totalorder %s3860_s12, %s3216_s6  ;;  %p3221_p1 = scmp.lt.u32.totalorder %s3860_s12, %s3930_s2 }
 0x26a   : > { %p3222_p5 = scmp.lt.u32.totalorder %s3220_s30, %s3216_s6  ;;  %p3224_p2 = scmp.lt.u32.totalorder %s3216_s6, %s3860_s12 }
 0x26b   : > { %p3218_p7 = pnand %p3217_p13, %p3963_p3 }
 0x26c   : > { %p3223_p4 = por %p3222_p5, %p3221_p1 }
 0x26d   : > { %p3219_p9 = pneg %p3218_p7 }
 0x26e   : > { %p3225_p6 = por %p3224_p2, %p3223_p4 }
 0x270   : > { %p3226_p10 = pnand %p3225_p6, %p3219_p9 }
 0x272   : > { %3229 = shalt.err (!%p3226_p10)
}
 0x273   : > { %s3338_s5 = smov 256   ;;  %s3339_s23 = smov 16  }
 0x274   : > { %2646 = dma.vmem_to_hbm [thread:$0]  (%p3963_p3), %s3863_s25, 512, %s3860_s12, %s3867_s24, %s3338_s5, %s3338_s5, %s3339_s23  }
 0x275 PF: > { %s3964_s26 = sld [smem:[#allocation12_spill]]  ;;  %s3965_s15 = sld [smem:[#allocation13_spill]] }
 0x276   : > { %p2663_p12 = scmp.ge.s32.totalorder %s3328_s19, 2 }
 0x27b   : > { %s2232_s21 = sand.u32 1, %s3964_s26   ;;  %p3966_p0 = scmp.ne.s32.totalorder %s3965_s15, 0 }
 0x27c   : > { %s2233_s3 = scalar_lea.sflag [#allocation5], %s2232_s21 }
 0x27d   : > { %p2657_p8 = pnand %p2663_p12, %p3966_p0 }
 0x27f   : > { %3283 = dma.done.wait (!%p2657_p8), %s2233_s3, 512  }
 0x280   : > { %3285 = vsyncadd (!%p2657_p8), %s2233_s3, 4294966784  ;;  %s19_s19 = sadd.s32 1, %s3328_s19   ;;  %s3967_s27 = sld [smem:[#allocation14_spill]] }
 0x281   : > { %p16_p11 = scmp.ge.s32.totalorder %s19_s19, 6   ;;  %s3968_s25 = sld [smem:[#allocation15_spill]] }
 0x282   : > { %s3969_s9 = smov %s3292_s10  ;;  %s3970_s10 = smov %s3296_s11 }
 0x283   : > { %s3971_s11 = smov %s3505_s8  ;;  %s3972_s12 = smov %s3304_s13 }
 0x284   : > { %s3973_s13 = smov %s3308_s14  ;;  %s3974_s14 = smov %s3510_s4 }
 0x285   : > { %s3975_s15 = smov %s3320_s17  ;;  %s3976_s16 = smov %s3324_s18 }
 0x286   : > { %s3977_s17 = smov %s3967_s27  ;;  %18 = sbr.rel (!%p16_p11) target bundleno = 12 (0xc), region = 87 }
 0x287   : > { %s3978_s18 = smov %s3968_s25 }
 0x28d   :  { %2238 = vsyncpa [#allocation4], 1 }
 0x28e   :  { %2240 = vsyncpa [#allocation4 + $0x1], 1 }
 0x28f   :  { %2241 = vsyncpa [#allocation7], 1 }
 0x290   :  { %2243 = vsyncpa [#allocation7 + $0x1], 1 }
 0x291   :  { %2244 = vsyncpa [#allocation5], 1 }
 0x292   :  { %2246 = vsyncpa [#allocation5 + $0x1], 1 }

</bundles_post_ra>
